<compile_context>
chip_gen: v5e
topology: v5e:2x2
jax: 0.10.0
libtpu: 0.0.40
codegen_flags: <defaults>
</compile_context>

<pallas_src>
import functools

import jax
import jax.numpy as jnp
from jax.experimental import pallas as pl
from jax.experimental.pallas import tpu as pltpu


def make_mha_kernel(num_heads, block_b, seq_len, dim_model, compute_dtype):
    H = num_heads
    N = seq_len
    D = dim_model
    hd = D // H
    scale = 1.0 / (hd ** 0.5)
    approx_recip = compute_dtype != jnp.float32
    rows = block_b * N

    def kernel(x_ref, wqkv_ref, bqkv_ref, wp_ref, bp_ref, o_ref, ctx_ref):
        # x block: (block_b, N, D), already compute_dtype (cast in the wrapper).
        x = x_ref[...].reshape(rows, D).astype(compute_dtype)

        # Fused Q/K/V projection: one MXU matmul with f32 accumulation, f32
        # bias add, then a SINGLE downcast of the whole (rows, 3D) slab.
        qkv = jnp.dot(x, wqkv_ref[...], preferred_element_type=jnp.float32)
        qkv = (qkv + bqkv_ref[...]).astype(compute_dtype)      # (rows, 3D)
        qkv = qkv.reshape(block_b, N, 3 * D)

        # Per-head attention with static lane slices. Each head's context goes
        # straight into the f32 VMEM scratch slice: no list accumulation, no
        # H-way lane concat, live range bounded to one head at a time.
        for h in range(H):
            q = qkv[:, :, h * hd:(h + 1) * hd]                  # (Bb, N, hd)
            k = qkv[:, :, D + h * hd:D + (h + 1) * hd]          # (Bb, N, hd)
            v = qkv[:, :, 2 * D + h * hd:2 * D + (h + 1) * hd]  # (Bb, N, hd)

            # Unscaled logits (reference applies the scale AFTER softmax).
            s = jnp.einsum('bqd,bkd->bqk', q, k,
                           preferred_element_type=jnp.float32)  # (Bb, N, N) f32
            m = jnp.max(s, axis=-1, keepdims=True)
            e = jnp.exp(s - m)                                  # f32 (EUP)
            denom = jnp.sum(e, axis=-1, keepdims=True)
            # softmax(s) / sqrt(hd) == e * (1/denom * 1/sqrt(hd))
            p = e * (pl.reciprocal(denom, approx=approx_recip) * scale)

            ctx_ref[:, :, h * hd:(h + 1) * hd] = jnp.einsum(
                'bqk,bkd->bqd', p.astype(compute_dtype), v,
                preferred_element_type=jnp.float32)             # (Bb, N, hd) f32

        ctx = ctx_ref[...].reshape(rows, D).astype(compute_dtype)

        # Output projection (pre-transposed weight, f32 accumulation + bias).
        out = jnp.dot(ctx, wp_ref[...], preferred_element_type=jnp.float32)
        out = out + bp_ref[...]                                 # (rows, D) f32
        o_ref[...] = out.reshape(block_b, N, D).astype(o_ref.dtype)

    return kernel


def _pick_block_b(batch, seq_len, max_rows=512):
    """Pack sequences per grid step: fill the MXU M dimension (target ~512
    rows, at least one 128/256-row granule) while keeping grid length >= 2 so
    the 'parallel' batch axis can shard across both v7x TensorCores."""
    bb = max(1, min(batch, max_rows // max(seq_len, 1)))
    while batch % bb:
        bb -= 1
    if batch >= 2 and batch // bb < 2:
        halved = max(d for d in range(1, batch // 2 + 1) if batch % d == 0)
        # Only trade MXU M-fill for grid length if a full 128-row granule is
        # still filled after halving (or was never filled to begin with).
        if halved * seq_len >= 128 or bb * seq_len < 128:
            bb = halved
    return bb


def pack_params(params, compute_dtype):
    """One-time layout work: pre-transpose to (in, out) and fuse the Q/K/V
    projections into a single (D, 3D) weight / (1, 3D) bias."""
    D = params["wq"].shape[0]
    wqkv = jnp.concatenate(
        [params["wq"].T, params["wk"].T, params["wv"].T], axis=1
    ).astype(compute_dtype)                                    # (D, 3D)
    bqkv = jnp.concatenate(
        [params["bq"], params["bk"], params["bv"]]
    ).reshape(1, 3 * D).astype(jnp.float32)                    # (1, 3D)
    wp = params["wp"].T.astype(compute_dtype)                  # (D, D)
    bp = params["bp"].reshape(1, D).astype(jnp.float32)        # (1, D)
    return wqkv, bqkv, wp, bp


def _build_pallas_call(B, N, D, num_heads, block_b, compute_dtype, out_dtype,
                       single_buffer_weights):
    if single_buffer_weights:
        # Invariant operands: constant index_map -> single buffer (frees one
        # full weight copy of VMEM; most valuable on v7x's 64 MiB).
        def wspec(shape):
            return pl.BlockSpec(shape, lambda b: (0,) * len(shape),
                                pipeline_mode=pl.Buffered(1))
    else:
        def wspec(shape):
            return pl.BlockSpec(shape, lambda b: (0,) * len(shape))

    x_spec = pl.BlockSpec((block_b, N, D), lambda b: (b, 0, 0))
    out_spec = pl.BlockSpec((block_b, N, D), lambda b: (b, 0, 0))

    bytes_c = jnp.dtype(compute_dtype).itemsize
    cost = pl.CostEstimate(
        flops=2 * B * N * D * (3 * D) + 4 * B * N * N * D + 2 * B * N * D * D,
        transcendentals=B * num_heads * N * N,
        bytes_accessed=(B * N * D * bytes_c                   # x (compute dtype)
                        + (3 * D * D + D * D) * bytes_c       # Wqkv, Wp
                        + 4 * D * 4                           # biases (f32)
                        + B * N * D * jnp.dtype(out_dtype).itemsize))

    return pl.pallas_call(
        make_mha_kernel(num_heads, block_b, N, D, compute_dtype),
        out_shape=jax.ShapeDtypeStruct((B, N, D), out_dtype),
        grid_spec=pltpu.PrefetchScalarGridSpec(
            num_scalar_prefetch=0,
            grid=(B // block_b,),
            in_specs=[
                x_spec,                  # x (compute_dtype)
                wspec((D, 3 * D)),       # fused Wqkv (pre-transposed)
                wspec((1, 3 * D)),       # fused bqkv (f32)
                wspec((D, D)),           # Wp (pre-transposed)
                wspec((1, D)),           # bp (f32)
            ],
            out_specs=out_spec,
            scratch_shapes=[pltpu.VMEM((block_b, N, D), jnp.float32)],
        ),
        compiler_params=pltpu.CompilerParams(
            dimension_semantics=("parallel",),
            # Budgeted for v7x's 64 MiB physical VMEM (with headroom); also
            # raises the 16/32 MiB scoped default on v5e/v6e.
            vmem_limit_bytes=48 * 1024 * 1024),
        cost_estimate=cost,
    )


@functools.partial(jax.jit, static_argnames=("num_heads", "compute_dtype",
                                             "block_b", "single_buffer_weights"))
def _mha_impl(x, params, num_heads, compute_dtype, block_b,
              single_buffer_weights):
    B, N, D = x.shape
    wqkv, bqkv, wp, bp = pack_params(params, compute_dtype)
    call = _build_pallas_call(B, N, D, num_heads, block_b, compute_dtype,
                              x.dtype, single_buffer_weights)
    # Cast activations before the pallas_call: halves HBM->VMEM DMA bytes and
    # the double-buffered activation tile; the kernel downcast anyway.
    return call(x.astype(compute_dtype), wqkv, bqkv, wp, bp)


_BUFFERED_ONE_OK = None  # cached probe: does this build accept pl.Buffered(1)?


def multi_head_attention(x, params, num_heads, compute_dtype=jnp.bfloat16,
                         block_b=None):
    """x: (B, N, D). params: dict of PyTorch-convention (out, in) weights."""
    global _BUFFERED_ONE_OK
    B, N, D = x.shape
    if block_b is None:
        block_b = _pick_block_b(B, N)
    kwargs = dict(num_heads=num_heads, compute_dtype=compute_dtype,
                  block_b=block_b)
    if _BUFFERED_ONE_OK is not False:
        try:
            out = _mha_impl(x, params, single_buffer_weights=True, **kwargs)
            if _BUFFERED_ONE_OK is None:
                jax.block_until_ready(out)   # validate compile+run once
                _BUFFERED_ONE_OK = True
            return out
        except Exception:
            _BUFFERED_ONE_OK = False         # fall back to double buffering
    return _mha_impl(x, params, single_buffer_weights=False, **kwargs)


def reference_mha(x, params, num_heads):
    """Pure-JAX reference mirroring the PyTorch forward exactly (f32)."""
    B, N, D = x.shape
    hd = D // num_heads
    q = x @ params["wq"].T + params["bq"]
    k = x @ params["wk"].T + params["bk"]
    v = x @ params["wv"].T + params["bv"]
    q = q.reshape(B, N, num_heads, hd).transpose(0, 2, 1, 3)
    k = k.reshape(B, N, num_heads, hd).transpose(0, 2, 1, 3)
    v = v.reshape(B, N, num_heads, hd).transpose(0, 2, 1, 3)
    qkt = jnp.einsum('bhqd,bhkd->bhqk', q, k)
    attn = jax.nn.softmax(qkt, axis=-1) / (hd ** 0.5)
    ctx = jnp.einsum('bhqk,bhkd->bhqd', attn, v)
    ctx = ctx.transpose(0, 2, 1, 3).reshape(B, N, D)
    return ctx @ params["wp"].T + params["bp"]


def init_params(key, dim_model):
    """Deterministic init mimicking nn.Linear default (uniform +-1/sqrt(in))."""
    bound = 1.0 / (dim_model ** 0.5)
    keys = jax.random.split(key, 8)

    def u(k, shape):
        return jax.random.uniform(k, shape, jnp.float32, -bound, bound)

    return {
        "wq": u(keys[0], (dim_model, dim_model)), "bq": u(keys[1], (dim_model,)),
        "wk": u(keys[2], (dim_model, dim_model)), "bk": u(keys[3], (dim_model,)),
        "wv": u(keys[4], (dim_model, dim_model)), "bv": u(keys[5], (dim_model,)),
        "wp": u(keys[6], (dim_model, dim_model)), "bp": u(keys[7], (dim_model,)),
    }


if __name__ == "__main__":
    B, N, D, H = 2, 8, 32, 4   # batch, seq, dim_model, num_heads

    key = jax.random.PRNGKey(0)
    kx, kp = jax.random.split(key)
    x = jax.random.normal(kx, (B, N, D), dtype=jnp.float32)
    params = init_params(kp, D)

    ref = reference_mha(x, params, H)

    # Optimized bf16-MXU path (f32 accumulation, f32 softmax).
    out = jax.block_until_ready(
        multi_head_attention(x, params, num_heads=H,
                             compute_dtype=jnp.bfloat16))
    assert out.shape == (B, N, D)
    assert jnp.allclose(out, ref, atol=3e-2, rtol=3e-2), "bf16 path mismatch"

    # Full-precision path for a tight numerical check of the same kernel.
    out_f32 = jax.block_until_ready(
        multi_head_attention(x, params, num_heads=H,
                             compute_dtype=jnp.float32))
    assert jnp.allclose(out_f32, ref, atol=1e-5, rtol=1e-5), "f32 path mismatch"

    print("KERNEL_OK")
</pallas_src>

<mosaic_0001>
module attributes {stable_mosaic.version = 11 : i64} {
  func.func @kernel(%arg0: i32, %arg1: memref<1x8x32xbf16, #tpu.memory_space<vmem>>, %arg2: memref<32x96xbf16, #tpu.memory_space<vmem>>, %arg3: memref<1x96xf32, #tpu.memory_space<vmem>>, %arg4: memref<32x32xbf16, #tpu.memory_space<vmem>>, %arg5: memref<1x32xf32, #tpu.memory_space<vmem>>, %arg6: memref<1x8x32xf32, #tpu.memory_space<vmem>>, %arg7: memref<1x8x32xf32, #tpu.memory_space<vmem>>) attributes {dimension_semantics = [#tpu.dimension_semantics<parallel>], iteration_bounds = array<i64: 2>, scalar_prefetch = 0 : i64, scratch_operands = 1 : i64, tpu.core_type = #tpu.core_type<tc>, window_params = [{transform_indices = @transform_0, window_bounds = array<i64: 1, 8, 32>}, {pipeline_mode = #tpu.pipeline_mode<synchronous>, transform_indices = @transform_1, window_bounds = array<i64: 32, 96>}, {pipeline_mode = #tpu.pipeline_mode<synchronous>, transform_indices = @transform_2, window_bounds = array<i64: 1, 96>}, {pipeline_mode = #tpu.pipeline_mode<synchronous>, transform_indices = @transform_3, window_bounds = array<i64: 32, 32>}, {pipeline_mode = #tpu.pipeline_mode<synchronous>, transform_indices = @transform_4, window_bounds = array<i64: 1, 32>}, {transform_indices = @transform_5, window_bounds = array<i64: 1, 8, 32>}]} {
    %c0 = arith.constant 0 : index
    %c0_0 = arith.constant 0 : index
    %c0_1 = arith.constant 0 : index
    %0 = vector.load %arg1[%c0, %c0_0, %c0_1] : memref<1x8x32xbf16, #tpu.memory_space<vmem>>, vector<1x8x32xbf16>
    %1 = vector.shape_cast %0 : vector<1x8x32xbf16> to vector<8x32xbf16>
    %c0_2 = arith.constant 0 : index
    %c0_3 = arith.constant 0 : index
    %2 = vector.load %arg2[%c0_2, %c0_3] : memref<32x96xbf16, #tpu.memory_space<vmem>>, vector<32x96xbf16>
    %cst = arith.constant dense<0.000000e+00> : vector<8x96xf32>
    %3 = tpu.matmul %1, %2, %cst {dimension_numbers = #tpu.dot_dimension_numbers<[1], [0], [0], [1], [0, 0, 1, 1], [], []>} : vector<8x32xbf16>, vector<32x96xbf16>, vector<8x96xf32> -> vector<8x96xf32>
    %c0_4 = arith.constant 0 : index
    %c0_5 = arith.constant 0 : index
    %4 = vector.load %arg3[%c0_4, %c0_5] : memref<1x96xf32, #tpu.memory_space<vmem>>, vector<1x96xf32>
    %5 = vector.broadcast %4 : vector<1x96xf32> to vector<8x96xf32>
    %6 = arith.addf %3, %5 : vector<8x96xf32>
    %7 = arith.truncf %6 : vector<8x96xf32> to vector<8x96xbf16>
    %8 = vector.shape_cast %7 : vector<8x96xbf16> to vector<1x8x96xbf16>
    %9 = vector.extract_strided_slice %8 {offsets = [0, 0, 0], sizes = [1, 8, 8], strides = [1, 1, 1]} : vector<1x8x96xbf16> to vector<1x8x8xbf16>
    %10 = vector.extract_strided_slice %8 {offsets = [0, 0, 32], sizes = [1, 8, 8], strides = [1, 1, 1]} : vector<1x8x96xbf16> to vector<1x8x8xbf16>
    %11 = vector.extract_strided_slice %8 {offsets = [0, 0, 64], sizes = [1, 8, 8], strides = [1, 1, 1]} : vector<1x8x96xbf16> to vector<1x8x8xbf16>
    "tpu.trace_start"() <{level = 10 : i32, message = "bqd,bkd->bqk"}> : () -> ()
    %cst_6 = arith.constant dense<0.000000e+00> : vector<1x8x8xf32>
    %12 = tpu.matmul %9, %10, %cst_6 {dimension_numbers = #tpu.dot_dimension_numbers<[2], [2], [1], [1], [0, 0, 0, 1, 1, 1], [0], [0]>} : vector<1x8x8xbf16>, vector<1x8x8xbf16>, vector<1x8x8xf32> -> vector<1x8x8xf32>
    "tpu.trace_stop"() : () -> ()
    %cst_7 = arith.constant dense<0xFF800000> : vector<1x8xf32>
    %13 = vector.multi_reduction <maximumf>, %12, %cst_7 [2] : vector<1x8x8xf32> to vector<1x8xf32>
    %14 = vector.shape_cast %13 : vector<1x8xf32> to vector<1x8x1xf32>
    %15 = vector.broadcast %14 : vector<1x8x1xf32> to vector<1x8x8xf32>
    %16 = arith.subf %12, %15 : vector<1x8x8xf32>
    %17 = math.exp %16 : vector<1x8x8xf32>
    %cst_8 = arith.constant dense<0.000000e+00> : vector<1x8xf32>
    %18 = vector.multi_reduction <add>, %17, %cst_8 [2] : vector<1x8x8xf32> to vector<1x8xf32>
    %19 = vector.shape_cast %18 : vector<1x8xf32> to vector<1x8x1xf32>
    %20 = tpu.reciprocal %19 {approx = true} : vector<1x8x1xf32> -> vector<1x8x1xf32>
    %cst_9 = arith.constant 0.353553385 : f32
    %21 = vector.broadcast %cst_9 : f32 to vector<1x8x1xf32>
    %22 = arith.mulf %20, %21 : vector<1x8x1xf32>
    %23 = vector.broadcast %22 : vector<1x8x1xf32> to vector<1x8x8xf32>
    %24 = arith.mulf %17, %23 : vector<1x8x8xf32>
    %25 = arith.truncf %24 : vector<1x8x8xf32> to vector<1x8x8xbf16>
    "tpu.trace_start"() <{level = 10 : i32, message = "bqk,bkd->bqd"}> : () -> ()
    %cst_10 = arith.constant dense<0.000000e+00> : vector<1x8x8xf32>
    %26 = tpu.matmul %25, %11, %cst_10 {dimension_numbers = #tpu.dot_dimension_numbers<[2], [1], [1], [2], [0, 0, 0, 1, 1, 2], [0], [0]>} : vector<1x8x8xbf16>, vector<1x8x8xbf16>, vector<1x8x8xf32> -> vector<1x8x8xf32>
    "tpu.trace_stop"() : () -> ()
    %c0_11 = arith.constant 0 : index
    %c0_12 = arith.constant 0 : index
    %c0_13 = arith.constant 0 : index
    %27 = vector.load %arg7[%c0_11, %c0_12, %c0_13] : memref<1x8x32xf32, #tpu.memory_space<vmem>>, vector<1x8x8xf32>
    tpu.vector_store %arg7[%c0_11, %c0_12, %c0_13], %26 {strides = array<i32>} : memref<1x8x32xf32, #tpu.memory_space<vmem>>, vector<1x8x8xf32>,
    %28 = vector.extract_strided_slice %8 {offsets = [0, 0, 8], sizes = [1, 8, 8], strides = [1, 1, 1]} : vector<1x8x96xbf16> to vector<1x8x8xbf16>
    %29 = vector.extract_strided_slice %8 {offsets = [0, 0, 40], sizes = [1, 8, 8], strides = [1, 1, 1]} : vector<1x8x96xbf16> to vector<1x8x8xbf16>
    %30 = vector.extract_strided_slice %8 {offsets = [0, 0, 72], sizes = [1, 8, 8], strides = [1, 1, 1]} : vector<1x8x96xbf16> to vector<1x8x8xbf16>
    "tpu.trace_start"() <{level = 10 : i32, message = "bqd,bkd->bqk"}> : () -> ()
    %cst_14 = arith.constant dense<0.000000e+00> : vector<1x8x8xf32>
    %31 = tpu.matmul %28, %29, %cst_14 {dimension_numbers = #tpu.dot_dimension_numbers<[2], [2], [1], [1], [0, 0, 0, 1, 1, 1], [0], [0]>} : vector<1x8x8xbf16>, vector<1x8x8xbf16>, vector<1x8x8xf32> -> vector<1x8x8xf32>
    "tpu.trace_stop"() : () -> ()
    %cst_15 = arith.constant dense<0xFF800000> : vector<1x8xf32>
    %32 = vector.multi_reduction <maximumf>, %31, %cst_15 [2] : vector<1x8x8xf32> to vector<1x8xf32>
    %33 = vector.shape_cast %32 : vector<1x8xf32> to vector<1x8x1xf32>
    %34 = vector.broadcast %33 : vector<1x8x1xf32> to vector<1x8x8xf32>
    %35 = arith.subf %31, %34 : vector<1x8x8xf32>
    %36 = math.exp %35 : vector<1x8x8xf32>
    %cst_16 = arith.constant dense<0.000000e+00> : vector<1x8xf32>
    %37 = vector.multi_reduction <add>, %36, %cst_16 [2] : vector<1x8x8xf32> to vector<1x8xf32>
    %38 = vector.shape_cast %37 : vector<1x8xf32> to vector<1x8x1xf32>
    %39 = tpu.reciprocal %38 {approx = true} : vector<1x8x1xf32> -> vector<1x8x1xf32>
    %cst_17 = arith.constant 0.353553385 : f32
    %40 = vector.broadcast %cst_17 : f32 to vector<1x8x1xf32>
    %41 = arith.mulf %39, %40 : vector<1x8x1xf32>
    %42 = vector.broadcast %41 : vector<1x8x1xf32> to vector<1x8x8xf32>
    %43 = arith.mulf %36, %42 : vector<1x8x8xf32>
    %44 = arith.truncf %43 : vector<1x8x8xf32> to vector<1x8x8xbf16>
    "tpu.trace_start"() <{level = 10 : i32, message = "bqk,bkd->bqd"}> : () -> ()
    %cst_18 = arith.constant dense<0.000000e+00> : vector<1x8x8xf32>
    %45 = tpu.matmul %44, %30, %cst_18 {dimension_numbers = #tpu.dot_dimension_numbers<[2], [1], [1], [2], [0, 0, 0, 1, 1, 2], [0], [0]>} : vector<1x8x8xbf16>, vector<1x8x8xbf16>, vector<1x8x8xf32> -> vector<1x8x8xf32>
    "tpu.trace_stop"() : () -> ()
    %c0_19 = arith.constant 0 : index
    %c0_20 = arith.constant 0 : index
    %c8 = arith.constant 8 : index
    %46 = vector.load %arg7[%c0_19, %c0_20, %c8] : memref<1x8x32xf32, #tpu.memory_space<vmem>>, vector<1x8x8xf32>
    tpu.vector_store %arg7[%c0_19, %c0_20, %c8], %45 {strides = array<i32>} : memref<1x8x32xf32, #tpu.memory_space<vmem>>, vector<1x8x8xf32>,
    %47 = vector.extract_strided_slice %8 {offsets = [0, 0, 16], sizes = [1, 8, 8], strides = [1, 1, 1]} : vector<1x8x96xbf16> to vector<1x8x8xbf16>
    %48 = vector.extract_strided_slice %8 {offsets = [0, 0, 48], sizes = [1, 8, 8], strides = [1, 1, 1]} : vector<1x8x96xbf16> to vector<1x8x8xbf16>
    %49 = vector.extract_strided_slice %8 {offsets = [0, 0, 80], sizes = [1, 8, 8], strides = [1, 1, 1]} : vector<1x8x96xbf16> to vector<1x8x8xbf16>
    "tpu.trace_start"() <{level = 10 : i32, message = "bqd,bkd->bqk"}> : () -> ()
    %cst_21 = arith.constant dense<0.000000e+00> : vector<1x8x8xf32>
    %50 = tpu.matmul %47, %48, %cst_21 {dimension_numbers = #tpu.dot_dimension_numbers<[2], [2], [1], [1], [0, 0, 0, 1, 1, 1], [0], [0]>} : vector<1x8x8xbf16>, vector<1x8x8xbf16>, vector<1x8x8xf32> -> vector<1x8x8xf32>
    "tpu.trace_stop"() : () -> ()
    %cst_22 = arith.constant dense<0xFF800000> : vector<1x8xf32>
    %51 = vector.multi_reduction <maximumf>, %50, %cst_22 [2] : vector<1x8x8xf32> to vector<1x8xf32>
    %52 = vector.shape_cast %51 : vector<1x8xf32> to vector<1x8x1xf32>
    %53 = vector.broadcast %52 : vector<1x8x1xf32> to vector<1x8x8xf32>
    %54 = arith.subf %50, %53 : vector<1x8x8xf32>
    %55 = math.exp %54 : vector<1x8x8xf32>
    %cst_23 = arith.constant dense<0.000000e+00> : vector<1x8xf32>
    %56 = vector.multi_reduction <add>, %55, %cst_23 [2] : vector<1x8x8xf32> to vector<1x8xf32>
    %57 = vector.shape_cast %56 : vector<1x8xf32> to vector<1x8x1xf32>
    %58 = tpu.reciprocal %57 {approx = true} : vector<1x8x1xf32> -> vector<1x8x1xf32>
    %cst_24 = arith.constant 0.353553385 : f32
    %59 = vector.broadcast %cst_24 : f32 to vector<1x8x1xf32>
    %60 = arith.mulf %58, %59 : vector<1x8x1xf32>
    %61 = vector.broadcast %60 : vector<1x8x1xf32> to vector<1x8x8xf32>
    %62 = arith.mulf %55, %61 : vector<1x8x8xf32>
    %63 = arith.truncf %62 : vector<1x8x8xf32> to vector<1x8x8xbf16>
    "tpu.trace_start"() <{level = 10 : i32, message = "bqk,bkd->bqd"}> : () -> ()
    %cst_25 = arith.constant dense<0.000000e+00> : vector<1x8x8xf32>
    %64 = tpu.matmul %63, %49, %cst_25 {dimension_numbers = #tpu.dot_dimension_numbers<[2], [1], [1], [2], [0, 0, 0, 1, 1, 2], [0], [0]>} : vector<1x8x8xbf16>, vector<1x8x8xbf16>, vector<1x8x8xf32> -> vector<1x8x8xf32>
    "tpu.trace_stop"() : () -> ()
    %c0_26 = arith.constant 0 : index
    %c0_27 = arith.constant 0 : index
    %c16 = arith.constant 16 : index
    %65 = vector.load %arg7[%c0_26, %c0_27, %c16] : memref<1x8x32xf32, #tpu.memory_space<vmem>>, vector<1x8x8xf32>
    tpu.vector_store %arg7[%c0_26, %c0_27, %c16], %64 {strides = array<i32>} : memref<1x8x32xf32, #tpu.memory_space<vmem>>, vector<1x8x8xf32>,
    %66 = vector.extract_strided_slice %8 {offsets = [0, 0, 24], sizes = [1, 8, 8], strides = [1, 1, 1]} : vector<1x8x96xbf16> to vector<1x8x8xbf16>
    %67 = vector.extract_strided_slice %8 {offsets = [0, 0, 56], sizes = [1, 8, 8], strides = [1, 1, 1]} : vector<1x8x96xbf16> to vector<1x8x8xbf16>
    %68 = vector.extract_strided_slice %8 {offsets = [0, 0, 88], sizes = [1, 8, 8], strides = [1, 1, 1]} : vector<1x8x96xbf16> to vector<1x8x8xbf16>
    "tpu.trace_start"() <{level = 10 : i32, message = "bqd,bkd->bqk"}> : () -> ()
    %cst_28 = arith.constant dense<0.000000e+00> : vector<1x8x8xf32>
    %69 = tpu.matmul %66, %67, %cst_28 {dimension_numbers = #tpu.dot_dimension_numbers<[2], [2], [1], [1], [0, 0, 0, 1, 1, 1], [0], [0]>} : vector<1x8x8xbf16>, vector<1x8x8xbf16>, vector<1x8x8xf32> -> vector<1x8x8xf32>
    "tpu.trace_stop"() : () -> ()
    %cst_29 = arith.constant dense<0xFF800000> : vector<1x8xf32>
    %70 = vector.multi_reduction <maximumf>, %69, %cst_29 [2] : vector<1x8x8xf32> to vector<1x8xf32>
    %71 = vector.shape_cast %70 : vector<1x8xf32> to vector<1x8x1xf32>
    %72 = vector.broadcast %71 : vector<1x8x1xf32> to vector<1x8x8xf32>
    %73 = arith.subf %69, %72 : vector<1x8x8xf32>
    %74 = math.exp %73 : vector<1x8x8xf32>
    %cst_30 = arith.constant dense<0.000000e+00> : vector<1x8xf32>
    %75 = vector.multi_reduction <add>, %74, %cst_30 [2] : vector<1x8x8xf32> to vector<1x8xf32>
    %76 = vector.shape_cast %75 : vector<1x8xf32> to vector<1x8x1xf32>
    %77 = tpu.reciprocal %76 {approx = true} : vector<1x8x1xf32> -> vector<1x8x1xf32>
    %cst_31 = arith.constant 0.353553385 : f32
    %78 = vector.broadcast %cst_31 : f32 to vector<1x8x1xf32>
    %79 = arith.mulf %77, %78 : vector<1x8x1xf32>
    %80 = vector.broadcast %79 : vector<1x8x1xf32> to vector<1x8x8xf32>
    %81 = arith.mulf %74, %80 : vector<1x8x8xf32>
    %82 = arith.truncf %81 : vector<1x8x8xf32> to vector<1x8x8xbf16>
    "tpu.trace_start"() <{level = 10 : i32, message = "bqk,bkd->bqd"}> : () -> ()
    %cst_32 = arith.constant dense<0.000000e+00> : vector<1x8x8xf32>
    %83 = tpu.matmul %82, %68, %cst_32 {dimension_numbers = #tpu.dot_dimension_numbers<[2], [1], [1], [2], [0, 0, 0, 1, 1, 2], [0], [0]>} : vector<1x8x8xbf16>, vector<1x8x8xbf16>, vector<1x8x8xf32> -> vector<1x8x8xf32>
    "tpu.trace_stop"() : () -> ()
    %c0_33 = arith.constant 0 : index
    %c0_34 = arith.constant 0 : index
    %c24 = arith.constant 24 : index
    %84 = vector.load %arg7[%c0_33, %c0_34, %c24] : memref<1x8x32xf32, #tpu.memory_space<vmem>>, vector<1x8x8xf32>
    tpu.vector_store %arg7[%c0_33, %c0_34, %c24], %83 {strides = array<i32>} : memref<1x8x32xf32, #tpu.memory_space<vmem>>, vector<1x8x8xf32>,
    %c0_35 = arith.constant 0 : index
    %c0_36 = arith.constant 0 : index
    %c0_37 = arith.constant 0 : index
    %85 = vector.load %arg7[%c0_35, %c0_36, %c0_37] : memref<1x8x32xf32, #tpu.memory_space<vmem>>, vector<1x8x32xf32>
    %86 = vector.shape_cast %85 : vector<1x8x32xf32> to vector<8x32xf32>
    %87 = arith.truncf %86 : vector<8x32xf32> to vector<8x32xbf16>
    %c0_38 = arith.constant 0 : index
    %c0_39 = arith.constant 0 : index
    %88 = vector.load %arg4[%c0_38, %c0_39] : memref<32x32xbf16, #tpu.memory_space<vmem>>, vector<32x32xbf16>
    %cst_40 = arith.constant dense<0.000000e+00> : vector<8x32xf32>
    %89 = tpu.matmul %87, %88, %cst_40 {dimension_numbers = #tpu.dot_dimension_numbers<[1], [0], [0], [1], [0, 0, 1, 1], [], []>} : vector<8x32xbf16>, vector<32x32xbf16>, vector<8x32xf32> -> vector<8x32xf32>
    %c0_41 = arith.constant 0 : index
    %c0_42 = arith.constant 0 : index
    %90 = vector.load %arg5[%c0_41, %c0_42] : memref<1x32xf32, #tpu.memory_space<vmem>>, vector<1x32xf32>
    %91 = vector.broadcast %90 : vector<1x32xf32> to vector<8x32xf32>
    %92 = arith.addf %89, %91 : vector<8x32xf32>
    %93 = vector.shape_cast %92 : vector<8x32xf32> to vector<1x8x32xf32>
    %c0_43 = arith.constant 0 : index
    %c0_44 = arith.constant 0 : index
    %c0_45 = arith.constant 0 : index
    %94 = vector.load %arg6[%c0_43, %c0_44, %c0_45] : memref<1x8x32xf32, #tpu.memory_space<vmem>>, vector<1x8x32xf32>
    tpu.vector_store %arg6[%c0_43, %c0_44, %c0_45], %93 {strides = array<i32>} : memref<1x8x32xf32, #tpu.memory_space<vmem>>, vector<1x8x32xf32>,
    return
  }
  func.func @transform_0(%arg0: i32) -> (i32, i32, i32) {
    %c0_i32 = arith.constant 0 : i32
    %c0_i32_0 = arith.constant 0 : i32
    %c0_i32_1 = arith.constant 0 : i32
    return %arg0, %c0_i32, %c0_i32_0 : i32, i32, i32
  }
  func.func @transform_1(%arg0: i32) -> (i32, i32) {
    %c0_i32 = arith.constant 0 : i32
    %c0_i32_0 = arith.constant 0 : i32
    %c0_i32_1 = arith.constant 0 : i32
    return %c0_i32, %c0_i32_0 : i32, i32
  }
  func.func @transform_2(%arg0: i32) -> (i32, i32) {
    %c0_i32 = arith.constant 0 : i32
    %c0_i32_0 = arith.constant 0 : i32
    %c0_i32_1 = arith.constant 0 : i32
    return %c0_i32, %c0_i32_0 : i32, i32
  }
  func.func @transform_3(%arg0: i32) -> (i32, i32) {
    %c0_i32 = arith.constant 0 : i32
    %c0_i32_0 = arith.constant 0 : i32
    %c0_i32_1 = arith.constant 0 : i32
    return %c0_i32, %c0_i32_0 : i32, i32
  }
  func.func @transform_4(%arg0: i32) -> (i32, i32) {
    %c0_i32 = arith.constant 0 : i32
    %c0_i32_0 = arith.constant 0 : i32
    %c0_i32_1 = arith.constant 0 : i32
    return %c0_i32, %c0_i32_0 : i32, i32
  }
  func.func @transform_5(%arg0: i32) -> (i32, i32, i32) {
    %c0_i32 = arith.constant 0 : i32
    %c0_i32_0 = arith.constant 0 : i32
    %c0_i32_1 = arith.constant 0 : i32
    return %arg0, %c0_i32, %c0_i32_0 : i32, i32, i32
  }
}

module attributes {stable_mosaic.version = 11 : i64} {
  func.func @kernel(%arg0: i32, %arg1: memref<1x8x32xbf16, #tpu.memory_space<vmem>>, %arg2: memref<32x96xbf16, #tpu.memory_space<vmem>>, %arg3: memref<1x96xf32, #tpu.memory_space<vmem>>, %arg4: memref<32x32xbf16, #tpu.memory_space<vmem>>, %arg5: memref<1x32xf32, #tpu.memory_space<vmem>>, %arg6: memref<1x8x32xf32, #tpu.memory_space<vmem>>, %arg7: memref<1x8x32xf32, #tpu.memory_space<vmem>>) attributes {dimension_semantics = [#tpu.dimension_semantics<parallel>], iteration_bounds = array<i64: 2>, scalar_prefetch = 0 : i64, scratch_operands = 1 : i64, tpu.core_type = #tpu.core_type<tc>, window_params = [{transform_indices = @transform_0, window_bounds = array<i64: 1, 8, 32>}, {pipeline_mode = #tpu.pipeline_mode<synchronous>, transform_indices = @transform_1, window_bounds = array<i64: 32, 96>}, {pipeline_mode = #tpu.pipeline_mode<synchronous>, transform_indices = @transform_2, window_bounds = array<i64: 1, 96>}, {pipeline_mode = #tpu.pipeline_mode<synchronous>, transform_indices = @transform_3, window_bounds = array<i64: 32, 32>}, {pipeline_mode = #tpu.pipeline_mode<synchronous>, transform_indices = @transform_4, window_bounds = array<i64: 1, 32>}, {transform_indices = @transform_5, window_bounds = array<i64: 1, 8, 32>}]} {
    %c0 = arith.constant 0 : index
    %c0_0 = arith.constant 0 : index
    %c0_1 = arith.constant 0 : index
    %0 = vector.load %arg1[%c0, %c0_0, %c0_1] : memref<1x8x32xbf16, #tpu.memory_space<vmem>>, vector<1x8x32xbf16>
    %1 = vector.shape_cast %0 : vector<1x8x32xbf16> to vector<8x32xbf16>
    %c0_2 = arith.constant 0 : index
    %c0_3 = arith.constant 0 : index
    %2 = vector.load %arg2[%c0_2, %c0_3] : memref<32x96xbf16, #tpu.memory_space<vmem>>, vector<32x96xbf16>
    %cst = arith.constant dense<0.000000e+00> : vector<8x96xf32>
    %3 = tpu.matmul %1, %2, %cst {dimension_numbers = #tpu.dot_dimension_numbers<[1], [0], [0], [1], [0, 0, 1, 1], [], []>} : vector<8x32xbf16>, vector<32x96xbf16>, vector<8x96xf32> -> vector<8x96xf32>
    %c0_4 = arith.constant 0 : index
    %c0_5 = arith.constant 0 : index
    %4 = vector.load %arg3[%c0_4, %c0_5] : memref<1x96xf32, #tpu.memory_space<vmem>>, vector<1x96xf32>
    %5 = vector.broadcast %4 : vector<1x96xf32> to vector<8x96xf32>
    %6 = arith.addf %3, %5 : vector<8x96xf32>
    %7 = arith.truncf %6 : vector<8x96xf32> to vector<8x96xbf16>
    %8 = vector.shape_cast %7 : vector<8x96xbf16> to vector<1x8x96xbf16>
    %9 = vector.extract_strided_slice %8 {offsets = [0, 0, 0], sizes = [1, 8, 8], strides = [1, 1, 1]} : vector<1x8x96xbf16> to vector<1x8x8xbf16>
    %10 = vector.extract_strided_slice %8 {offsets = [0, 0, 32], sizes = [1, 8, 8], strides = [1, 1, 1]} : vector<1x8x96xbf16> to vector<1x8x8xbf16>
    %11 = vector.extract_strided_slice %8 {offsets = [0, 0, 64], sizes = [1, 8, 8], strides = [1, 1, 1]} : vector<1x8x96xbf16> to vector<1x8x8xbf16>
    "tpu.trace_start"() <{level = 10 : i32, message = "bqd,bkd->bqk"}> : () -> ()
    %cst_6 = arith.constant dense<0.000000e+00> : vector<1x8x8xf32>
    %12 = tpu.matmul %9, %10, %cst_6 {dimension_numbers = #tpu.dot_dimension_numbers<[2], [2], [1], [1], [0, 0, 0, 1, 1, 1], [0], [0]>} : vector<1x8x8xbf16>, vector<1x8x8xbf16>, vector<1x8x8xf32> -> vector<1x8x8xf32>
    "tpu.trace_stop"() : () -> ()
    %cst_7 = arith.constant dense<0xFF800000> : vector<1x8xf32>
    %13 = vector.multi_reduction <maximumf>, %12, %cst_7 [2] : vector<1x8x8xf32> to vector<1x8xf32>
    %14 = vector.shape_cast %13 : vector<1x8xf32> to vector<1x8x1xf32>
    %15 = vector.broadcast %14 : vector<1x8x1xf32> to vector<1x8x8xf32>
    %16 = arith.subf %12, %15 : vector<1x8x8xf32>
    %17 = math.exp %16 : vector<1x8x8xf32>
    %cst_8 = arith.constant dense<0.000000e+00> : vector<1x8xf32>
    %18 = vector.multi_reduction <add>, %17, %cst_8 [2] : vector<1x8x8xf32> to vector<1x8xf32>
    %19 = vector.shape_cast %18 : vector<1x8xf32> to vector<1x8x1xf32>
    %20 = tpu.reciprocal %19 {approx = true} : vector<1x8x1xf32> -> vector<1x8x1xf32>
    %cst_9 = arith.constant 0.353553385 : f32
    %21 = vector.broadcast %cst_9 : f32 to vector<1x8x1xf32>
    %22 = arith.mulf %20, %21 : vector<1x8x1xf32>
    %23 = vector.broadcast %22 : vector<1x8x1xf32> to vector<1x8x8xf32>
    %24 = arith.mulf %17, %23 : vector<1x8x8xf32>
    %25 = arith.truncf %24 : vector<1x8x8xf32> to vector<1x8x8xbf16>
    "tpu.trace_start"() <{level = 10 : i32, message = "bqk,bkd->bqd"}> : () -> ()
    %cst_10 = arith.constant dense<0.000000e+00> : vector<1x8x8xf32>
    %26 = tpu.matmul %25, %11, %cst_10 {dimension_numbers = #tpu.dot_dimension_numbers<[2], [1], [1], [2], [0, 0, 0, 1, 1, 2], [0], [0]>} : vector<1x8x8xbf16>, vector<1x8x8xbf16>, vector<1x8x8xf32> -> vector<1x8x8xf32>
    "tpu.trace_stop"() : () -> ()
    %c0_11 = arith.constant 0 : index
    %c0_12 = arith.constant 0 : index
    %c0_13 = arith.constant 0 : index
    %27 = vector.load %arg7[%c0_11, %c0_12, %c0_13] : memref<1x8x32xf32, #tpu.memory_space<vmem>>, vector<1x8x8xf32>
    tpu.vector_store %arg7[%c0_11, %c0_12, %c0_13], %26 {strides = array<i32>} : memref<1x8x32xf32, #tpu.memory_space<vmem>>, vector<1x8x8xf32>,
    %28 = vector.extract_strided_slice %8 {offsets = [0, 0, 8], sizes = [1, 8, 8], strides = [1, 1, 1]} : vector<1x8x96xbf16> to vector<1x8x8xbf16>
    %29 = vector.extract_strided_slice %8 {offsets = [0, 0, 40], sizes = [1, 8, 8], strides = [1, 1, 1]} : vector<1x8x96xbf16> to vector<1x8x8xbf16>
    %30 = vector.extract_strided_slice %8 {offsets = [0, 0, 72], sizes = [1, 8, 8], strides = [1, 1, 1]} : vector<1x8x96xbf16> to vector<1x8x8xbf16>
    "tpu.trace_start"() <{level = 10 : i32, message = "bqd,bkd->bqk"}> : () -> ()
    %cst_14 = arith.constant dense<0.000000e+00> : vector<1x8x8xf32>
    %31 = tpu.matmul %28, %29, %cst_14 {dimension_numbers = #tpu.dot_dimension_numbers<[2], [2], [1], [1], [0, 0, 0, 1, 1, 1], [0], [0]>} : vector<1x8x8xbf16>, vector<1x8x8xbf16>, vector<1x8x8xf32> -> vector<1x8x8xf32>
    "tpu.trace_stop"() : () -> ()
    %cst_15 = arith.constant dense<0xFF800000> : vector<1x8xf32>
    %32 = vector.multi_reduction <maximumf>, %31, %cst_15 [2] : vector<1x8x8xf32> to vector<1x8xf32>
    %33 = vector.shape_cast %32 : vector<1x8xf32> to vector<1x8x1xf32>
    %34 = vector.broadcast %33 : vector<1x8x1xf32> to vector<1x8x8xf32>
    %35 = arith.subf %31, %34 : vector<1x8x8xf32>
    %36 = math.exp %35 : vector<1x8x8xf32>
    %cst_16 = arith.constant dense<0.000000e+00> : vector<1x8xf32>
    %37 = vector.multi_reduction <add>, %36, %cst_16 [2] : vector<1x8x8xf32> to vector<1x8xf32>
    %38 = vector.shape_cast %37 : vector<1x8xf32> to vector<1x8x1xf32>
    %39 = tpu.reciprocal %38 {approx = true} : vector<1x8x1xf32> -> vector<1x8x1xf32>
    %cst_17 = arith.constant 0.353553385 : f32
    %40 = vector.broadcast %cst_17 : f32 to vector<1x8x1xf32>
    %41 = arith.mulf %39, %40 : vector<1x8x1xf32>
    %42 = vector.broadcast %41 : vector<1x8x1xf32> to vector<1x8x8xf32>
    %43 = arith.mulf %36, %42 : vector<1x8x8xf32>
    %44 = arith.truncf %43 : vector<1x8x8xf32> to vector<1x8x8xbf16>
    "tpu.trace_start"() <{level = 10 : i32, message = "bqk,bkd->bqd"}> : () -> ()
    %cst_18 = arith.constant dense<0.000000e+00> : vector<1x8x8xf32>
    %45 = tpu.matmul %44, %30, %cst_18 {dimension_numbers = #tpu.dot_dimension_numbers<[2], [1], [1], [2], [0, 0, 0, 1, 1, 2], [0], [0]>} : vector<1x8x8xbf16>, vector<1x8x8xbf16>, vector<1x8x8xf32> -> vector<1x8x8xf32>
    "tpu.trace_stop"() : () -> ()
    %c0_19 = arith.constant 0 : index
    %c0_20 = arith.constant 0 : index
    %c8 = arith.constant 8 : index
    %46 = vector.load %arg7[%c0_19, %c0_20, %c8] : memref<1x8x32xf32, #tpu.memory_space<vmem>>, vector<1x8x8xf32>
    tpu.vector_store %arg7[%c0_19, %c0_20, %c8], %45 {strides = array<i32>} : memref<1x8x32xf32, #tpu.memory_space<vmem>>, vector<1x8x8xf32>,
    %47 = vector.extract_strided_slice %8 {offsets = [0, 0, 16], sizes = [1, 8, 8], strides = [1, 1, 1]} : vector<1x8x96xbf16> to vector<1x8x8xbf16>
    %48 = vector.extract_strided_slice %8 {offsets = [0, 0, 48], sizes = [1, 8, 8], strides = [1, 1, 1]} : vector<1x8x96xbf16> to vector<1x8x8xbf16>
    %49 = vector.extract_strided_slice %8 {offsets = [0, 0, 80], sizes = [1, 8, 8], strides = [1, 1, 1]} : vector<1x8x96xbf16> to vector<1x8x8xbf16>
    "tpu.trace_start"() <{level = 10 : i32, message = "bqd,bkd->bqk"}> : () -> ()
    %cst_21 = arith.constant dense<0.000000e+00> : vector<1x8x8xf32>
    %50 = tpu.matmul %47, %48, %cst_21 {dimension_numbers = #tpu.dot_dimension_numbers<[2], [2], [1], [1], [0, 0, 0, 1, 1, 1], [0], [0]>} : vector<1x8x8xbf16>, vector<1x8x8xbf16>, vector<1x8x8xf32> -> vector<1x8x8xf32>
    "tpu.trace_stop"() : () -> ()
    %cst_22 = arith.constant dense<0xFF800000> : vector<1x8xf32>
    %51 = vector.multi_reduction <maximumf>, %50, %cst_22 [2] : vector<1x8x8xf32> to vector<1x8xf32>
    %52 = vector.shape_cast %51 : vector<1x8xf32> to vector<1x8x1xf32>
    %53 = vector.broadcast %52 : vector<1x8x1xf32> to vector<1x8x8xf32>
    %54 = arith.subf %50, %53 : vector<1x8x8xf32>
    %55 = math.exp %54 : vector<1x8x8xf32>
    %cst_23 = arith.constant dense<0.000000e+00> : vector<1x8xf32>
    %56 = vector.multi_reduction <add>, %55, %cst_23 [2] : vector<1x8x8xf32> to vector<1x8xf32>
    %57 = vector.shape_cast %56 : vector<1x8xf32> to vector<1x8x1xf32>
    %58 = tpu.reciprocal %57 {approx = true} : vector<1x8x1xf32> -> vector<1x8x1xf32>
    %cst_24 = arith.constant 0.353553385 : f32
    %59 = vector.broadcast %cst_24 : f32 to vector<1x8x1xf32>
    %60 = arith.mulf %58, %59 : vector<1x8x1xf32>
    %61 = vector.broadcast %60 : vector<1x8x1xf32> to vector<1x8x8xf32>
    %62 = arith.mulf %55, %61 : vector<1x8x8xf32>
    %63 = arith.truncf %62 : vector<1x8x8xf32> to vector<1x8x8xbf16>
    "tpu.trace_start"() <{level = 10 : i32, message = "bqk,bkd->bqd"}> : () -> ()
    %cst_25 = arith.constant dense<0.000000e+00> : vector<1x8x8xf32>
    %64 = tpu.matmul %63, %49, %cst_25 {dimension_numbers = #tpu.dot_dimension_numbers<[2], [1], [1], [2], [0, 0, 0, 1, 1, 2], [0], [0]>} : vector<1x8x8xbf16>, vector<1x8x8xbf16>, vector<1x8x8xf32> -> vector<1x8x8xf32>
    "tpu.trace_stop"() : () -> ()
    %c0_26 = arith.constant 0 : index
    %c0_27 = arith.constant 0 : index
    %c16 = arith.constant 16 : index
    %65 = vector.load %arg7[%c0_26, %c0_27, %c16] : memref<1x8x32xf32, #tpu.memory_space<vmem>>, vector<1x8x8xf32>
    tpu.vector_store %arg7[%c0_26, %c0_27, %c16], %64 {strides = array<i32>} : memref<1x8x32xf32, #tpu.memory_space<vmem>>, vector<1x8x8xf32>,
    %66 = vector.extract_strided_slice %8 {offsets = [0, 0, 24], sizes = [1, 8, 8], strides = [1, 1, 1]} : vector<1x8x96xbf16> to vector<1x8x8xbf16>
    %67 = vector.extract_strided_slice %8 {offsets = [0, 0, 56], sizes = [1, 8, 8], strides = [1, 1, 1]} : vector<1x8x96xbf16> to vector<1x8x8xbf16>
    %68 = vector.extract_strided_slice %8 {offsets = [0, 0, 88], sizes = [1, 8, 8], strides = [1, 1, 1]} : vector<1x8x96xbf16> to vector<1x8x8xbf16>
    "tpu.trace_start"() <{level = 10 : i32, message = "bqd,bkd->bqk"}> : () -> ()
    %cst_28 = arith.constant dense<0.000000e+00> : vector<1x8x8xf32>
    %69 = tpu.matmul %66, %67, %cst_28 {dimension_numbers = #tpu.dot_dimension_numbers<[2], [2], [1], [1], [0, 0, 0, 1, 1, 1], [0], [0]>} : vector<1x8x8xbf16>, vector<1x8x8xbf16>, vector<1x8x8xf32> -> vector<1x8x8xf32>
    "tpu.trace_stop"() : () -> ()
    %cst_29 = arith.constant dense<0xFF800000> : vector<1x8xf32>
    %70 = vector.multi_reduction <maximumf>, %69, %cst_29 [2] : vector<1x8x8xf32> to vector<1x8xf32>
    %71 = vector.shape_cast %70 : vector<1x8xf32> to vector<1x8x1xf32>
    %72 = vector.broadcast %71 : vector<1x8x1xf32> to vector<1x8x8xf32>
    %73 = arith.subf %69, %72 : vector<1x8x8xf32>
    %74 = math.exp %73 : vector<1x8x8xf32>
    %cst_30 = arith.constant dense<0.000000e+00> : vector<1x8xf32>
    %75 = vector.multi_reduction <add>, %74, %cst_30 [2] : vector<1x8x8xf32> to vector<1x8xf32>
    %76 = vector.shape_cast %75 : vector<1x8xf32> to vector<1x8x1xf32>
    %77 = tpu.reciprocal %76 {approx = true} : vector<1x8x1xf32> -> vector<1x8x1xf32>
    %cst_31 = arith.constant 0.353553385 : f32
    %78 = vector.broadcast %cst_31 : f32 to vector<1x8x1xf32>
    %79 = arith.mulf %77, %78 : vector<1x8x1xf32>
    %80 = vector.broadcast %79 : vector<1x8x1xf32> to vector<1x8x8xf32>
    %81 = arith.mulf %74, %80 : vector<1x8x8xf32>
    %82 = arith.truncf %81 : vector<1x8x8xf32> to vector<1x8x8xbf16>
    "tpu.trace_start"() <{level = 10 : i32, message = "bqk,bkd->bqd"}> : () -> ()
    %cst_32 = arith.constant dense<0.000000e+00> : vector<1x8x8xf32>
    %83 = tpu.matmul %82, %68, %cst_32 {dimension_numbers = #tpu.dot_dimension_numbers<[2], [1], [1], [2], [0, 0, 0, 1, 1, 2], [0], [0]>} : vector<1x8x8xbf16>, vector<1x8x8xbf16>, vector<1x8x8xf32> -> vector<1x8x8xf32>
    "tpu.trace_stop"() : () -> ()
    %c0_33 = arith.constant 0 : index
    %c0_34 = arith.constant 0 : index
    %c24 = arith.constant 24 : index
    %84 = vector.load %arg7[%c0_33, %c0_34, %c24] : memref<1x8x32xf32, #tpu.memory_space<vmem>>, vector<1x8x8xf32>
    tpu.vector_store %arg7[%c0_33, %c0_34, %c24], %83 {strides = array<i32>} : memref<1x8x32xf32, #tpu.memory_space<vmem>>, vector<1x8x8xf32>,
    %c0_35 = arith.constant 0 : index
    %c0_36 = arith.constant 0 : index
    %c0_37 = arith.constant 0 : index
    %85 = vector.load %arg7[%c0_35, %c0_36, %c0_37] : memref<1x8x32xf32, #tpu.memory_space<vmem>>, vector<1x8x32xf32>
    %86 = vector.shape_cast %85 : vector<1x8x32xf32> to vector<8x32xf32>
    %87 = arith.truncf %86 : vector<8x32xf32> to vector<8x32xbf16>
    %c0_38 = arith.constant 0 : index
    %c0_39 = arith.constant 0 : index
    %88 = vector.load %arg4[%c0_38, %c0_39] : memref<32x32xbf16, #tpu.memory_space<vmem>>, vector<32x32xbf16>
    %cst_40 = arith.constant dense<0.000000e+00> : vector<8x32xf32>
    %89 = tpu.matmul %87, %88, %cst_40 {dimension_numbers = #tpu.dot_dimension_numbers<[1], [0], [0], [1], [0, 0, 1, 1], [], []>} : vector<8x32xbf16>, vector<32x32xbf16>, vector<8x32xf32> -> vector<8x32xf32>
    %c0_41 = arith.constant 0 : index
    %c0_42 = arith.constant 0 : index
    %90 = vector.load %arg5[%c0_41, %c0_42] : memref<1x32xf32, #tpu.memory_space<vmem>>, vector<1x32xf32>
    %91 = vector.broadcast %90 : vector<1x32xf32> to vector<8x32xf32>
    %92 = arith.addf %89, %91 : vector<8x32xf32>
    %93 = vector.shape_cast %92 : vector<8x32xf32> to vector<1x8x32xf32>
    %c0_43 = arith.constant 0 : index
    %c0_44 = arith.constant 0 : index
    %c0_45 = arith.constant 0 : index
    %94 = vector.load %arg6[%c0_43, %c0_44, %c0_45] : memref<1x8x32xf32, #tpu.memory_space<vmem>>, vector<1x8x32xf32>
    tpu.vector_store %arg6[%c0_43, %c0_44, %c0_45], %93 {strides = array<i32>} : memref<1x8x32xf32, #tpu.memory_space<vmem>>, vector<1x8x32xf32>,
    return
  }
  func.func @transform_0(%arg0: i32) -> (i32, i32, i32) {
    %c0_i32 = arith.constant 0 : i32
    %c0_i32_0 = arith.constant 0 : i32
    %c0_i32_1 = arith.constant 0 : i32
    return %arg0, %c0_i32, %c0_i32_0 : i32, i32, i32
  }
  func.func @transform_1(%arg0: i32) -> (i32, i32) {
    %c0_i32 = arith.constant 0 : i32
    %c0_i32_0 = arith.constant 0 : i32
    %c0_i32_1 = arith.constant 0 : i32
    return %c0_i32, %c0_i32_0 : i32, i32
  }
  func.func @transform_2(%arg0: i32) -> (i32, i32) {
    %c0_i32 = arith.constant 0 : i32
    %c0_i32_0 = arith.constant 0 : i32
    %c0_i32_1 = arith.constant 0 : i32
    return %c0_i32, %c0_i32_0 : i32, i32
  }
  func.func @transform_3(%arg0: i32) -> (i32, i32) {
    %c0_i32 = arith.constant 0 : i32
    %c0_i32_0 = arith.constant 0 : i32
    %c0_i32_1 = arith.constant 0 : i32
    return %c0_i32, %c0_i32_0 : i32, i32
  }
  func.func @transform_4(%arg0: i32) -> (i32, i32) {
    %c0_i32 = arith.constant 0 : i32
    %c0_i32_0 = arith.constant 0 : i32
    %c0_i32_1 = arith.constant 0 : i32
    return %c0_i32, %c0_i32_0 : i32, i32
  }
  func.func @transform_5(%arg0: i32) -> (i32, i32, i32) {
    %c0_i32 = arith.constant 0 : i32
    %c0_i32_0 = arith.constant 0 : i32
    %c0_i32_1 = arith.constant 0 : i32
    return %arg0, %c0_i32, %c0_i32_0 : i32, i32, i32
  }
}

</mosaic_0001>

<bundles_post_ra>
// kernel: _mha_impl.1
= control target key start
LH: loop header
LB: loop body
LE: loop exit
PB: predicated region body
PF: predicated region fallthrough
CT: control target
= control target key end

     0   :  { %10 = vsyncpa [#allocation4], 0  ;;  %s987_s0 = inlined_call_operand.vmem [shape: bf16[2,8,32], index: 0, kind: input, shape index: {}]   ;;  %s988_s1 = inlined_call_operand.vmem [shape: bf16[32,96], index: 1, kind: input, shape index: {}]   ;;  %s989_s2 = inlined_call_operand.vmem [shape: f32[1,96], index: 2, kind: input, shape index: {}]   ;;  %s990_s3 = inlined_call_operand.vmem [shape: bf16[32,32], index: 3, kind: input, shape index: {}]   ;;  %s991_s4 = inlined_call_operand.vmem [shape: f32[1,32], index: 4, kind: input, shape index: {}]   ;;  %s992_s5 = inlined_call_operand.hbm [shape: f32[2,8,32], index: 5, kind: output, shape index: {}]  }
   0x1   :  { %12 = vsyncpa [#allocation4 + $0x1], 0  ;;  %s843_s18 = smov 0   ;;  %s845_s19 = smov 0  }
   0x2   :  { %s847_s20 = smov 0   ;;  %s849_s21 = smov 0  }
   0x3 LB: > { %s864_s22 = sadd.s32 4294967295, %s797_s21   ;;  %s624_s23 = sadd.s32 4294967294, %s797_s21   ;;  %s797_s21 = sphi %s849_s21, %s998_s21   ;;  %s793_s20 = sphi %s847_s20, %s997_s20   ;;  %s789_s19 = sphi %s845_s19, %s996_s19   ;;  %s785_s18 = sphi %s843_s18, %s995_s18  }
   0x4   : > { %s868_s24 = sadd.s32 1, %s797_s21   ;;  %s135_s25 = sadd.s32 1, %s793_s20 }
   0x5   : > { %s132_s26 = ssub.s32 %s797_s21, %s868_s24  ;;  %p145_p0 = scmp.ne.s32.totalorder %s793_s20, %s789_s19 }
   0x6   : > { %p133_p1 = scmp.eq.s32.totalorder %s132_s26, 0  ;;  %p146_p2 = scmp.eq.s32.totalorder %s864_s22, 1 }
   0x7   : > { %p151_p3 = scmp.ne.s32.totalorder %s789_s19, %s785_s18  ;;  %p152_p4 = scmp.eq.s32.totalorder %s624_s23, 1 }
   0x8   : > { %s879_s27 = scalar_select %p133_p1, %s793_s20, %s135_s25  }
   0x9   : > { %p881_p5 = por %p146_p2, %p145_p0  ;;  %p885_p6 = por %p152_p4, %p151_p3 }
   0xa   : > { %p627_p7 = scmp.ge.s32.totalorder %s797_s21, 1  ;;  %p189_p8 = scmp.lt.s32.totalorder %s797_s21, 3 }
   0xc   : > { %p190_p9 = pnand %p627_p7, %p189_p8 }
   0xd   : > { %p216_p10 = scmp.lt.s32.totalorder (!%p190_p9), %s864_s22, 1  ;;  %s799_s16 = smov (!%p190_p9), 104  }
   0xe   : > { %193 = sbr.rel (%p190_p9) target bundleno = 1106 (0x452), region = 40  ;;  %s800_s17 = smov (!%p190_p9), 120  }
   0xf   : > { %s801_s23 = smov (!%p190_p9), 96   ;;  %s802_s25 = smov (!%p190_p9), 80  }
  0x10   : > { %s803_s26 = smov (!%p190_p9), 72   ;;  %s804_s30 = smov (!%p190_p9), 88  }
  0x11   : > { %s805_s6 = smov (!%p190_p9), 112   ;;  %s806_s7 = smov (!%p190_p9), 64  }
  0x12   : > { %s807_s8 = smov (!%p190_p9), 40   ;;  %s810_s11 = smov (!%p190_p9), 8  }
  0x13   : > { %v661_v0 = vld [vmem:[%s988_s1 + $0x8] sm:$0xff]  ;;  %v660_v1 = vld [vmem:[%s988_s1] sm:$0xff]  ;;  %s217_s9 = scalar_select %p216_p10, %s864_s22, 1  ;;  %vm242_vm0 = vcmask 261120   ;;  %vm265_vm1 = vcmask 64512   ;;  %vm303_vm2 = vcmask 1043456  }
  0x14   : > { %252 = vmatpush.bf16.msra.mxu0 %v661_v0  ;;  %v717_v3 = vld [vmem:[%s989_s2] ss:$0 sm:$0xff]  ;;  %s811_s12 = smov 16   ;;  %vm382_vm3 = vcmask 130112   ;;  %vm445_vm4 = vcmask 195712   ;;  %vm508_vm5 = vcmask 261312  }
  0x15   : > { %s629_s10 = sshll.u32 %s217_s9, 2  ;;  %s808_s9 = smov 56  }
  0x16   : > { %s219_s13 = scalar_lea.vmem %s987_s0, %s629_s10  ;;  %s809_s10 = smov 48  }
  0x17   : > { %v221_v2 = vld [vmem:[%s219_s13] sm:$0xf]  ;;  %s812_s13 = smov 24  }
  0x18   : > { %253 = vmatpush.bf16.msra.mxu0 %v660_v1 }
  0x1b   : > { %638 = vmatmul.msk.bf16.vlgmr.msra.gmra.mxu0 %vm242_vm0, %v221_v2 }
  0x98   : > { %v255_v4 = vpop.f32.mrf.mxu0 }
  0x99   : > { %v256_v5 = vadd.f32 %v717_v3, %v255_v4 }
  0x9b   : > { %v259_v6 = vpack.c.bf16 %v256_v5, %v256_v5 }
  0x9d   : > { %v261_v7 = vunpack.c.l.b16 %v259_v6 }
  0x9f   : > { %v906_v8 = vpack.c.b16 %v261_v7, %v261_v7 }
  0xa0   : > { %v257_v9 = vpop.f32.mrf.mxu0 }
  0xa1   : > { %447 = vrot.lane.b32.xlu2 %v906_v8, %s799_s16  ;;  %321 = vrot.lane.b32.xlu1 %v906_v8, %s800_s17  ;;  %s755_s17 = scalar_lea.hbm %s992_s5, 16 }
  0xa2   : > { %263 = vrot.lane.b32.xlu0 %v906_v8, %s801_s23  ;;  %s213_s23 = sand.u32 1, %s789_s19  }
  0xa9   : > { %386 = vrot.lane.b32.xlu2 %v906_v8, %s802_s25  ;;  %449 = vrot.lane.b32.xlu1 %v906_v8, %s803_s26  ;;  %s657_s25 = sshll.u32 %s864_s22, 3  ;;  %s628_s26 = sshll.u32 %s213_s23, 3 }
  0xaa   : > { %323 = vrot.lane.b32.xlu0 %v906_v8, %s804_s30  ;;  %s550_s22 = scalar_lea.sflag [#allocation4], %s213_s23 }
  0xb2   : > { %384 = vrot.lane.b32.xlu0 %v906_v8, %s805_s6 }
  0xfb   : > { %v448_v10 = vpop.permute.xlu2 %447 }
 0x103   : > { %v387_v11 = vpop.permute.xlu2 %386 }
 0x104   : > { %v392_v12 = vsel %vm265_vm1, %v387_v11, 0 }
 0x105   : > { %401 = vmatpush.bf16.xpose.msrb.mxu0 %v392_v12 }
 0x113   : > { %v322_v13 = vpop.permute.xlu1 %321 }
 0x114   : > { %v264_v14 = vpop.permute.xlu0 %263 }
 0x115   : > { %v270_v15 = vsel %vm265_vm1, %v264_v14, 0 }
 0x116   : > { %279 = vmatpush.bf16.xpose.msra.mxu1 %v270_v15 }
 0x11b   : > { %v450_v16 = vpop.permute.xlu1 %449 }
 0x11c   : > { %v324_v17 = vpop.permute.xlu0 %323  ;;  %v455_v18 = vsel %vm265_vm1, %v450_v16, 0 }
 0x11d   : > { %639 = vmatmul.msk.bf16.vlgmr.msra.gmra.mxu1 %vm265_vm1, %v259_v6  ;;  %v329_v19 = vsel %vm265_vm1, %v324_v17, 0 }
 0x11e   : > { %338 = vmatpush.bf16.xpose.msra.mxu3 %v329_v19 }
 0x124   : > { %v385_v20 = vpop.permute.xlu0 %384 }
 0x125   : > { %641 = vmatmul.msk.bf16.vlgmr.msra.gmra.mxu3 %vm265_vm1, %v322_v13  ;;  %643 = vmatmul.msk.bf16.vlgmr.msrb.gmra.mxu0 %vm265_vm1, %v385_v20 }
 0x126   : > { %464 = vmatpush.bf16.xpose.msrb.mxu3 %v455_v18 }
 0x135   : > { %645 = vmatmul.msk.bf16.vlgmr.msrb.gmra.mxu3 %vm265_vm1, %v448_v10 }
 0x19a   : > { %v281_v21 = vpop.f32.mrf.mxu1 }
 0x19b   : > { %v285_v22 = vsel %vm265_vm1, %v281_v21, -inf }
 0x19c   : > { %286 = vmax.xlane.f32.xlu1 %v285_v22 }
 0x1a2   : > { %v283_v23 = vpop.f32.mrf.mxu1  ;;  %v403_v24 = vpop.f32.mrf.mxu0 }
 0x1a3   : > { %v407_v29 = vsel %vm265_vm1, %v403_v24, -inf }
 0x1a8   : > { %v340_v25 = vpop.f32.mrf.mxu3 }
 0x1a9   : > { %v344_v26 = vsel %vm265_vm1, %v340_v25, -inf }
 0x1aa   : > { %345 = vmax.xlane.f32.xlu2 %v344_v26  ;;  %v405_v27 = vpop.f32.mrf.mxu0  ;;  %v662_v26 = vld [vmem:[%s990_s3] sm:$0xff] }
 0x1b0   : > { %v342_v28 = vpop.f32.mrf.mxu3 }
 0x1b2   : > { %408 = vmax.xlane.f32.xlu2 %v407_v29 }
 0x1b8   : > { %v466_v30 = vpop.f32.mrf.mxu3 }
 0x1b9   : > { %v470_v31 = vsel %vm265_vm1, %v466_v30, -inf }
 0x1ba   : > { %471 = vmax.xlane.f32.xlu0 %v470_v31 }
 0x1c0   : > { %v468_v32 = vpop.f32.mrf.mxu3 }
 0x1c1   : > { %v718_v32 = vld [vmem:[%s991_s4] ss:$0 sm:$0xff] }
 0x1ca   : > { %298 = vrot.lane.b32.xlu2 %v906_v8, %s806_s7  ;;  %s560_s7 = scalar_lea.hbm %s992_s5, %s657_s25 }
 0x1d2   : > { %483 = vrot.lane.b32.xlu2 %v906_v8, %s807_s8 }
 0x20f   : > { %v287_v33 = vpop.xlane.xlu1 %286 }
 0x210   : > { %v288_v34 = vsub.f32 %v281_v21, %v287_v33 }
 0x212   : > { %v289_v35 = vmul.f32 1.442695, %v288_v34 }
 0x214   : > { %719 = vpow2.f32 %v289_v35 }
 0x21a   : > { %v720_v36 = vpop.eup %719 }
 0x21b   : > { %v291_v37 = vsel %vm265_vm1, %v720_v36, 0.0 }
 0x21c   : > { %292 = vadd.xlane.f32.xlu1 %v291_v37 }
 0x21d   : > { %v346_v38 = vpop.xlane.xlu2 %345 }
 0x21e   : > { %v347_v41 = vsub.f32 %v340_v25, %v346_v38  ;;  %v663_v25 = vld [vmem:[%s990_s3 + $0x8] sm:$0xff] }
 0x21f   : > { %541 = vmatpush.bf16.msra.mxu0 %v663_v25 }
 0x220   : > { %v348_v43 = vmul.f32 1.442695, %v347_v41 }
 0x223   : > { %542 = vmatpush.bf16.msra.mxu0 %v662_v26 }
 0x225   : > { %v409_v39 = vpop.xlane.xlu2 %408 }
 0x226   : > { %v410_v40 = vsub.f32 %v403_v24, %v409_v39 }
 0x228   : > { %v411_v42 = vmul.f32 1.442695, %v410_v40 }
 0x22a   : > { %721 = vpow2.f32 %v411_v42 }
 0x22b   : > { %723 = vpow2.f32 %v348_v43 }
 0x22d   : > { %v299_v44 = vpop.permute.xlu2 %298  ;;  %v472_v45 = vpop.xlane.xlu0 %471 }
 0x22e   : > { %v305_v46 = vsel %vm303_vm2, %v299_v44, 0  ;;  %v473_v48 = vsub.f32 %v466_v30, %v472_v45 }
 0x22f   : > { %314 = vmatpush.bf16.msra.mxu2 %v305_v46 }
 0x230   : > { %v722_v47 = vpop.eup %721  ;;  %v474_v50 = vmul.f32 1.442695, %v473_v48 }
 0x231   : > { %v413_v49 = vsel %vm265_vm1, %v722_v47, 0.0  ;;  %v724_v51 = vpop.eup %723 }
 0x232   : > { %414 = vadd.xlane.f32.xlu0 %v413_v49  ;;  %725 = vpow2.f32 %v474_v50  ;;  %v350_v52 = vsel %vm265_vm1, %v724_v51, 0.0 }
 0x235   : > { %357 = vrot.lane.b32.xlu1 %v906_v8, %s808_s9  ;;  %v484_v61 = vpop.permute.xlu2 %483 }
 0x236   : > { %v489_v0 = vsel %vm303_vm2, %v484_v61, 0 }
 0x238   : > { %v726_v53 = vpop.eup %725 }
 0x239   : > { %v476_v54 = vsel %vm265_vm1, %v726_v53, 0.0 }
 0x23a   : > { %351 = vadd.xlane.f32.xlu0 %v350_v52 }
 0x242   : > { %477 = vadd.xlane.f32.xlu0 %v476_v54 }
 0x256   : > { %420 = vrot.lane.b32.xlu0 %v906_v8, %s809_s10  ;;  %s215_s10 = scalar_lea.vmem [#allocation3], %s628_s26 }
 0x28f   : > { %v293_v55 = vpop.xlane.xlu1 %292 }
 0x290   : > { %727 = vrcp.f32 %v293_v55 }
 0x296   : > { %v728_v56 = vpop.eup %727 }
 0x297   : > { %v295_v57 = vmul.f32 0.35355338, %v728_v56 }
 0x299   : > { %v296_v58 = vmul.f32 %v720_v36, %v295_v57 }
 0x29b   : > { %v297_v59 = vpack.c.bf16 %v296_v58, %v296_v58 }
 0x29d   : > { %640 = vmatmul.msk.bf16.vlgmr.msra.gmra.mxu2 %vm265_vm1, %v297_v59 }
 0x2a5   : > { %v415_v60 = vpop.xlane.xlu0 %414 }
 0x2a7   : > { %v358_v62 = vpop.permute.xlu1 %357 }
 0x2a8   : > { %v363_v63 = vsel %vm303_vm2, %v358_v62, 0 }
 0x2a9   : > { %372 = vmatpush.bf16.msrb.mxu2 %v363_v63 }
 0x2ad   : > { %498 = vmatpush.bf16.msra.mxu2 %v489_v0  ;;  %v352_v1 = vpop.xlane.xlu0 %351 }
 0x2ae   : > { %729 = vrcp.f32 %v352_v1 }
 0x2b4   : > { %v730_v2 = vpop.eup %729 }
 0x2b5   : > { %v354_v3 = vmul.f32 0.35355338, %v730_v2  ;;  %v478_v4 = vpop.xlane.xlu0 %477 }
 0x2b6   : > { %731 = vrcp.f32 %v478_v4 }
 0x2b7   : > { %v355_v5 = vmul.f32 %v724_v51, %v354_v3  ;;  %733 = vrcp.f32 %v415_v60 }
 0x2b9   : > { %v356_v6 = vpack.c.bf16 %v355_v5, %v355_v5 }
 0x2bb   : > { %642 = vmatmul.msk.bf16.vlgmr.msrb.gmra.mxu2 %vm265_vm1, %v356_v6 }
 0x2bc   : > { %v732_v7 = vpop.eup %731 }
 0x2bd   : > { %v734_v8 = vpop.eup %733  ;;  %v480_v9 = vmul.f32 0.35355338, %v732_v7 }
 0x2be   : > { %v417_v10 = vmul.f32 0.35355338, %v734_v8 }
 0x2bf   : > { %v481_v11 = vmul.f32 %v726_v53, %v480_v9 }
 0x2c0   : > { %v418_v12 = vmul.f32 %v722_v47, %v417_v10 }
 0x2c1   : > { %v482_v14 = vpack.c.bf16 %v481_v11, %v481_v11 }
 0x2c2   : > { %v419_v16 = vpack.c.bf16 %v418_v12, %v418_v12 }
 0x2c8   : > { %v421_v13 = vpop.permute.xlu0 %420 }
 0x2c9   : > { %v426_v15 = vsel %vm303_vm2, %v421_v13, 0 }
 0x2ca   : > { %435 = vmatpush.bf16.msrb.mxu1 %v426_v15 }
 0x2cb   : > { %646 = vmatmul.msk.bf16.vlgmr.msra.gmra.mxu2 %vm265_vm1, %v482_v14 }
 0x2cd   : > { %644 = vmatmul.msk.bf16.vlgmr.msrb.gmra.mxu1 %vm265_vm1, %v419_v16 }
 0x320   : > { %v316_v17 = vpop.f32.mrf.mxu2 }
 0x321   : > { %320 = vst.msk [vmem:[#allocation2] sm:$0xff] %vm265_vm1, %v316_v17 }
 0x328   : > { %v318_v18 = vpop.f32.mrf.mxu2 }
 0x33e   : > { %v374_v19 = vpop.f32.mrf.mxu2 }
 0x33f   : > { %379 = vrot.lane.b32.xlu1 %v374_v19, %s810_s11  ;;  %s562_s11 = sshll.u32 %s215_s10, 4  ;;  %s563_s11 = int_to_ptr.vmem [resolvable:$true] %s562_s11 }
 0x346   : > { %v376_v20 = vpop.f32.mrf.mxu2 }
 0x34a   : > { %v437_v21 = vpop.f32.mrf.mxu1 }
 0x34b   : > { %442 = vrot.lane.b32.xlu2 %v437_v21, %s811_s12  ;;  %s564_s12 = sshll.u32 %s560_s7, 4  ;;  %s565_s12 = int_to_ptr.hbm [resolvable:$true] %s564_s12 }
 0x34e   : > { %v500_v22 = vpop.f32.mrf.mxu2 }
 0x34f   : > { %505 = vrot.lane.b32.xlu1 %v500_v22, %s812_s13  ;;  %s749_s13 = sshra.s32 %s565_s12, 4  ;;  %s750_s13 = int_to_ptr.hbm [resolvable:$true] %s749_s13 }
 0x350   : > { %s751_s14 = scalar_lea.hbm %s750_s13, 8  ;;  %p756_p0 = scmp.lt.s32.totalorder %s750_s13, %s992_s5 }
 0x351   : > { %p752_p11 = scmp.ne.s32.totalorder %s750_s13, %s751_s14  ;;  %p757_p1 = scmp.lt.s32.totalorder %s755_s17, %s751_s14 }
 0x352   : > { %v439_v23 = vpop.f32.mrf.mxu1 }
 0x353   : > { %p753_p12 = pnand %p752_p11, %p881_p5  ;;  %p758_p2 = por %p757_p1, %p756_p0 }
 0x355   : > { %p754_p13 = pneg %p753_p12 }
 0x356   : > { %v502_v24 = vpop.f32.mrf.mxu2 }
 0x357   : > { %p759_p3 = pnand %p758_p2, %p754_p13 }
 0x3a5   : > { %v443_v28 = vpop.permute.xlu2 %442 }
 0x3b1   : > { %v380_v27 = vpop.permute.xlu1 %379 }
 0x3b2   : > { %383 = vst.msk [vmem:[#allocation2] sm:$0xff] %vm382_vm3, %v380_v27 }
 0x3b3   : > { %446 = vst.msk [vmem:[#allocation2] sm:$0xff] %vm445_vm4, %v443_v28 }
 0x3c1   : > { %v506_v29 = vpop.permute.xlu1 %505 }
 0x3c2   : > { %509 = vst.msk [vmem:[#allocation2] sm:$0xff] %vm508_vm5, %v506_v29 }
 0x3c9   : > { %v510_v30 = vld [vmem:[#allocation2] sm:$0xff] }
 0x3ca   : > { %v511_v31 = vpack.c.bf16 %v510_v30, %v510_v30 }
 0x3cc   : > { %655 = vmatmul.msk.bf16.vlgmr.msra.gmra.mxu0 %vm242_vm0, %v511_v31 }
 0x449   : > { %v544_v33 = vpop.f32.mrf.mxu0 }
 0x44a   : > { %v545_v34 = vadd.f32 %v718_v32, %v544_v33 }
 0x44c   : > { %548 = vst.msk [vmem:[%s215_s10] sm:$0xff] %vm242_vm0, %v545_v34 }
 0x44d   : > { %762 = shalt.err (!%p759_p3)
}
 0x44e   : > { %664 = dma.vmem_to_hbm [thread:$0]  (%p881_p5), %s563_s11, 128, %s565_s12, %s550_s22  }
 0x451   : > { %v546_v35 = vpop.f32.mrf.mxu0 }
 0x452 PF: > { %p670_p4 = scmp.ge.s32.totalorder %s797_s21, 2  ;;  %s576_s23 = sand.u32 1, %s785_s18  }
 0x453   : > { %s577_s30 = scalar_lea.sflag [#allocation4], %s576_s23 }
 0x454   : > { %p667_p7 = pnand %p670_p4, %p885_p6 }
 0x456   : > { %p668_p8 = pneg %p667_p7 }
 0x458   : > { %780 = dma.done.wait (%p668_p8), %s577_s30, 128  }
 0x459   : > { %782 = vsyncadd (%p668_p8), %s577_s30, 4294967168  ;;  %p15_p9 = scmp.ge.s32.totalorder %s868_s24, 4   ;;  %s995_s18 = smov %s789_s19 }
 0x45a   : > { %s996_s19 = smov %s793_s20  ;;  %s997_s20 = smov %s879_s27 }
 0x45b   : > { %s998_s21 = smov %s868_s24  ;;  %17 = sbr.rel (!%p15_p9) target bundleno = 3 (0x3), region = 75 }
 0x460   :  { %583 = vsyncpa [#allocation4], 1 }
 0x461   :  { %585 = vsyncpa [#allocation4 + $0x1], 1 }

// kernel: _mha_impl.1
= control target key start
LH: loop header
LB: loop body
LE: loop exit
PB: predicated region body
PF: predicated region fallthrough
CT: control target
= control target key end

     0   :  { %10 = vsyncpa [#allocation4], 0  ;;  %s987_s0 = inlined_call_operand.vmem [shape: bf16[2,8,32], index: 0, kind: input, shape index: {}]   ;;  %s988_s1 = inlined_call_operand.vmem [shape: bf16[32,96], index: 1, kind: input, shape index: {}]   ;;  %s989_s2 = inlined_call_operand.vmem [shape: f32[1,96], index: 2, kind: input, shape index: {}]   ;;  %s990_s3 = inlined_call_operand.vmem [shape: bf16[32,32], index: 3, kind: input, shape index: {}]   ;;  %s991_s4 = inlined_call_operand.vmem [shape: f32[1,32], index: 4, kind: input, shape index: {}]   ;;  %s992_s5 = inlined_call_operand.hbm [shape: f32[2,8,32], index: 5, kind: output, shape index: {}]  }
   0x1   :  { %12 = vsyncpa [#allocation4 + $0x1], 0  ;;  %s843_s18 = smov 0   ;;  %s845_s19 = smov 0  }
   0x2   :  { %s847_s20 = smov 0   ;;  %s849_s21 = smov 0  }
   0x3 LB: > { %s864_s22 = sadd.s32 4294967295, %s797_s21   ;;  %s624_s23 = sadd.s32 4294967294, %s797_s21   ;;  %s797_s21 = sphi %s849_s21, %s998_s21   ;;  %s793_s20 = sphi %s847_s20, %s997_s20   ;;  %s789_s19 = sphi %s845_s19, %s996_s19   ;;  %s785_s18 = sphi %s843_s18, %s995_s18  }
   0x4   : > { %s868_s24 = sadd.s32 1, %s797_s21   ;;  %s135_s25 = sadd.s32 1, %s793_s20 }
   0x5   : > { %s132_s26 = ssub.s32 %s797_s21, %s868_s24  ;;  %p145_p0 = scmp.ne.s32.totalorder %s793_s20, %s789_s19 }
   0x6   : > { %p133_p1 = scmp.eq.s32.totalorder %s132_s26, 0  ;;  %p146_p2 = scmp.eq.s32.totalorder %s864_s22, 1 }
   0x7   : > { %p151_p3 = scmp.ne.s32.totalorder %s789_s19, %s785_s18  ;;  %p152_p4 = scmp.eq.s32.totalorder %s624_s23, 1 }
   0x8   : > { %s879_s27 = scalar_select %p133_p1, %s793_s20, %s135_s25  }
   0x9   : > { %p881_p5 = por %p146_p2, %p145_p0  ;;  %p885_p6 = por %p152_p4, %p151_p3 }
   0xa   : > { %p627_p7 = scmp.ge.s32.totalorder %s797_s21, 1  ;;  %p189_p8 = scmp.lt.s32.totalorder %s797_s21, 3 }
   0xc   : > { %p190_p9 = pnand %p627_p7, %p189_p8 }
   0xd   : > { %p216_p10 = scmp.lt.s32.totalorder (!%p190_p9), %s864_s22, 1  ;;  %s799_s16 = smov (!%p190_p9), 104  }
   0xe   : > { %193 = sbr.rel (%p190_p9) target bundleno = 1106 (0x452), region = 40  ;;  %s800_s17 = smov (!%p190_p9), 120  }
   0xf   : > { %s801_s23 = smov (!%p190_p9), 96   ;;  %s802_s25 = smov (!%p190_p9), 80  }
  0x10   : > { %s803_s26 = smov (!%p190_p9), 72   ;;  %s804_s30 = smov (!%p190_p9), 88  }
  0x11   : > { %s805_s6 = smov (!%p190_p9), 112   ;;  %s806_s7 = smov (!%p190_p9), 64  }
  0x12   : > { %s807_s8 = smov (!%p190_p9), 40   ;;  %s810_s11 = smov (!%p190_p9), 8  }
  0x13   : > { %v661_v0 = vld [vmem:[%s988_s1 + $0x8] sm:$0xff]  ;;  %v660_v1 = vld [vmem:[%s988_s1] sm:$0xff]  ;;  %s217_s9 = scalar_select %p216_p10, %s864_s22, 1  ;;  %vm242_vm0 = vcmask 261120   ;;  %vm265_vm1 = vcmask 64512   ;;  %vm303_vm2 = vcmask 1043456  }
  0x14   : > { %252 = vmatpush.bf16.msra.mxu0 %v661_v0  ;;  %v717_v3 = vld [vmem:[%s989_s2] ss:$0 sm:$0xff]  ;;  %s811_s12 = smov 16   ;;  %vm382_vm3 = vcmask 130112   ;;  %vm445_vm4 = vcmask 195712   ;;  %vm508_vm5 = vcmask 261312  }
  0x15   : > { %s629_s10 = sshll.u32 %s217_s9, 2  ;;  %s808_s9 = smov 56  }
  0x16   : > { %s219_s13 = scalar_lea.vmem %s987_s0, %s629_s10  ;;  %s809_s10 = smov 48  }
  0x17   : > { %v221_v2 = vld [vmem:[%s219_s13] sm:$0xf]  ;;  %s812_s13 = smov 24  }
  0x18   : > { %253 = vmatpush.bf16.msra.mxu0 %v660_v1 }
  0x1b   : > { %638 = vmatmul.msk.bf16.vlgmr.msra.gmra.mxu0 %vm242_vm0, %v221_v2 }
  0x98   : > { %v255_v4 = vpop.f32.mrf.mxu0 }
  0x99   : > { %v256_v5 = vadd.f32 %v717_v3, %v255_v4 }
  0x9b   : > { %v259_v6 = vpack.c.bf16 %v256_v5, %v256_v5 }
  0x9d   : > { %v261_v7 = vunpack.c.l.b16 %v259_v6 }
  0x9f   : > { %v906_v8 = vpack.c.b16 %v261_v7, %v261_v7 }
  0xa0   : > { %v257_v9 = vpop.f32.mrf.mxu0 }
  0xa1   : > { %447 = vrot.lane.b32.xlu2 %v906_v8, %s799_s16  ;;  %321 = vrot.lane.b32.xlu1 %v906_v8, %s800_s17  ;;  %s755_s17 = scalar_lea.hbm %s992_s5, 16 }
  0xa2   : > { %263 = vrot.lane.b32.xlu0 %v906_v8, %s801_s23  ;;  %s213_s23 = sand.u32 1, %s789_s19  }
  0xa9   : > { %386 = vrot.lane.b32.xlu2 %v906_v8, %s802_s25  ;;  %449 = vrot.lane.b32.xlu1 %v906_v8, %s803_s26  ;;  %s657_s25 = sshll.u32 %s864_s22, 3  ;;  %s628_s26 = sshll.u32 %s213_s23, 3 }
  0xaa   : > { %323 = vrot.lane.b32.xlu0 %v906_v8, %s804_s30  ;;  %s550_s22 = scalar_lea.sflag [#allocation4], %s213_s23 }
  0xb2   : > { %384 = vrot.lane.b32.xlu0 %v906_v8, %s805_s6 }
  0xfb   : > { %v448_v10 = vpop.permute.xlu2 %447 }
 0x103   : > { %v387_v11 = vpop.permute.xlu2 %386 }
 0x104   : > { %v392_v12 = vsel %vm265_vm1, %v387_v11, 0 }
 0x105   : > { %401 = vmatpush.bf16.xpose.msrb.mxu0 %v392_v12 }
 0x113   : > { %v322_v13 = vpop.permute.xlu1 %321 }
 0x114   : > { %v264_v14 = vpop.permute.xlu0 %263 }
 0x115   : > { %v270_v15 = vsel %vm265_vm1, %v264_v14, 0 }
 0x116   : > { %279 = vmatpush.bf16.xpose.msra.mxu1 %v270_v15 }
 0x11b   : > { %v450_v16 = vpop.permute.xlu1 %449 }
 0x11c   : > { %v324_v17 = vpop.permute.xlu0 %323  ;;  %v455_v18 = vsel %vm265_vm1, %v450_v16, 0 }
 0x11d   : > { %639 = vmatmul.msk.bf16.vlgmr.msra.gmra.mxu1 %vm265_vm1, %v259_v6  ;;  %v329_v19 = vsel %vm265_vm1, %v324_v17, 0 }
 0x11e   : > { %338 = vmatpush.bf16.xpose.msra.mxu3 %v329_v19 }
 0x124   : > { %v385_v20 = vpop.permute.xlu0 %384 }
 0x125   : > { %641 = vmatmul.msk.bf16.vlgmr.msra.gmra.mxu3 %vm265_vm1, %v322_v13  ;;  %643 = vmatmul.msk.bf16.vlgmr.msrb.gmra.mxu0 %vm265_vm1, %v385_v20 }
 0x126   : > { %464 = vmatpush.bf16.xpose.msrb.mxu3 %v455_v18 }
 0x135   : > { %645 = vmatmul.msk.bf16.vlgmr.msrb.gmra.mxu3 %vm265_vm1, %v448_v10 }
 0x19a   : > { %v281_v21 = vpop.f32.mrf.mxu1 }
 0x19b   : > { %v285_v22 = vsel %vm265_vm1, %v281_v21, -inf }
 0x19c   : > { %286 = vmax.xlane.f32.xlu1 %v285_v22 }
 0x1a2   : > { %v283_v23 = vpop.f32.mrf.mxu1  ;;  %v403_v24 = vpop.f32.mrf.mxu0 }
 0x1a3   : > { %v407_v29 = vsel %vm265_vm1, %v403_v24, -inf }
 0x1a8   : > { %v340_v25 = vpop.f32.mrf.mxu3 }
 0x1a9   : > { %v344_v26 = vsel %vm265_vm1, %v340_v25, -inf }
 0x1aa   : > { %345 = vmax.xlane.f32.xlu2 %v344_v26  ;;  %v405_v27 = vpop.f32.mrf.mxu0  ;;  %v662_v26 = vld [vmem:[%s990_s3] sm:$0xff] }
 0x1b0   : > { %v342_v28 = vpop.f32.mrf.mxu3 }
 0x1b2   : > { %408 = vmax.xlane.f32.xlu2 %v407_v29 }
 0x1b8   : > { %v466_v30 = vpop.f32.mrf.mxu3 }
 0x1b9   : > { %v470_v31 = vsel %vm265_vm1, %v466_v30, -inf }
 0x1ba   : > { %471 = vmax.xlane.f32.xlu0 %v470_v31 }
 0x1c0   : > { %v468_v32 = vpop.f32.mrf.mxu3 }
 0x1c1   : > { %v718_v32 = vld [vmem:[%s991_s4] ss:$0 sm:$0xff] }
 0x1ca   : > { %298 = vrot.lane.b32.xlu2 %v906_v8, %s806_s7  ;;  %s560_s7 = scalar_lea.hbm %s992_s5, %s657_s25 }
 0x1d2   : > { %483 = vrot.lane.b32.xlu2 %v906_v8, %s807_s8 }
 0x20f   : > { %v287_v33 = vpop.xlane.xlu1 %286 }
 0x210   : > { %v288_v34 = vsub.f32 %v281_v21, %v287_v33 }
 0x212   : > { %v289_v35 = vmul.f32 1.442695, %v288_v34 }
 0x214   : > { %719 = vpow2.f32 %v289_v35 }
 0x21a   : > { %v720_v36 = vpop.eup %719 }
 0x21b   : > { %v291_v37 = vsel %vm265_vm1, %v720_v36, 0.0 }
 0x21c   : > { %292 = vadd.xlane.f32.xlu1 %v291_v37 }
 0x21d   : > { %v346_v38 = vpop.xlane.xlu2 %345 }
 0x21e   : > { %v347_v41 = vsub.f32 %v340_v25, %v346_v38  ;;  %v663_v25 = vld [vmem:[%s990_s3 + $0x8] sm:$0xff] }
 0x21f   : > { %541 = vmatpush.bf16.msra.mxu0 %v663_v25 }
 0x220   : > { %v348_v43 = vmul.f32 1.442695, %v347_v41 }
 0x223   : > { %542 = vmatpush.bf16.msra.mxu0 %v662_v26 }
 0x225   : > { %v409_v39 = vpop.xlane.xlu2 %408 }
 0x226   : > { %v410_v40 = vsub.f32 %v403_v24, %v409_v39 }
 0x228   : > { %v411_v42 = vmul.f32 1.442695, %v410_v40 }
 0x22a   : > { %721 = vpow2.f32 %v411_v42 }
 0x22b   : > { %723 = vpow2.f32 %v348_v43 }
 0x22d   : > { %v299_v44 = vpop.permute.xlu2 %298  ;;  %v472_v45 = vpop.xlane.xlu0 %471 }
 0x22e   : > { %v305_v46 = vsel %vm303_vm2, %v299_v44, 0  ;;  %v473_v48 = vsub.f32 %v466_v30, %v472_v45 }
 0x22f   : > { %314 = vmatpush.bf16.msra.mxu2 %v305_v46 }
 0x230   : > { %v722_v47 = vpop.eup %721  ;;  %v474_v50 = vmul.f32 1.442695, %v473_v48 }
 0x231   : > { %v413_v49 = vsel %vm265_vm1, %v722_v47, 0.0  ;;  %v724_v51 = vpop.eup %723 }
 0x232   : > { %414 = vadd.xlane.f32.xlu0 %v413_v49  ;;  %725 = vpow2.f32 %v474_v50  ;;  %v350_v52 = vsel %vm265_vm1, %v724_v51, 0.0 }
 0x235   : > { %357 = vrot.lane.b32.xlu1 %v906_v8, %s808_s9  ;;  %v484_v61 = vpop.permute.xlu2 %483 }
 0x236   : > { %v489_v0 = vsel %vm303_vm2, %v484_v61, 0 }
 0x238   : > { %v726_v53 = vpop.eup %725 }
 0x239   : > { %v476_v54 = vsel %vm265_vm1, %v726_v53, 0.0 }
 0x23a   : > { %351 = vadd.xlane.f32.xlu0 %v350_v52 }
 0x242   : > { %477 = vadd.xlane.f32.xlu0 %v476_v54 }
 0x256   : > { %420 = vrot.lane.b32.xlu0 %v906_v8, %s809_s10  ;;  %s215_s10 = scalar_lea.vmem [#allocation3], %s628_s26 }
 0x28f   : > { %v293_v55 = vpop.xlane.xlu1 %292 }
 0x290   : > { %727 = vrcp.f32 %v293_v55 }
 0x296   : > { %v728_v56 = vpop.eup %727 }
 0x297   : > { %v295_v57 = vmul.f32 0.35355338, %v728_v56 }
 0x299   : > { %v296_v58 = vmul.f32 %v720_v36, %v295_v57 }
 0x29b   : > { %v297_v59 = vpack.c.bf16 %v296_v58, %v296_v58 }
 0x29d   : > { %640 = vmatmul.msk.bf16.vlgmr.msra.gmra.mxu2 %vm265_vm1, %v297_v59 }
 0x2a5   : > { %v415_v60 = vpop.xlane.xlu0 %414 }
 0x2a7   : > { %v358_v62 = vpop.permute.xlu1 %357 }
 0x2a8   : > { %v363_v63 = vsel %vm303_vm2, %v358_v62, 0 }
 0x2a9   : > { %372 = vmatpush.bf16.msrb.mxu2 %v363_v63 }
 0x2ad   : > { %498 = vmatpush.bf16.msra.mxu2 %v489_v0  ;;  %v352_v1 = vpop.xlane.xlu0 %351 }
 0x2ae   : > { %729 = vrcp.f32 %v352_v1 }
 0x2b4   : > { %v730_v2 = vpop.eup %729 }
 0x2b5   : > { %v354_v3 = vmul.f32 0.35355338, %v730_v2  ;;  %v478_v4 = vpop.xlane.xlu0 %477 }
 0x2b6   : > { %731 = vrcp.f32 %v478_v4 }
 0x2b7   : > { %v355_v5 = vmul.f32 %v724_v51, %v354_v3  ;;  %733 = vrcp.f32 %v415_v60 }
 0x2b9   : > { %v356_v6 = vpack.c.bf16 %v355_v5, %v355_v5 }
 0x2bb   : > { %642 = vmatmul.msk.bf16.vlgmr.msrb.gmra.mxu2 %vm265_vm1, %v356_v6 }
 0x2bc   : > { %v732_v7 = vpop.eup %731 }
 0x2bd   : > { %v734_v8 = vpop.eup %733  ;;  %v480_v9 = vmul.f32 0.35355338, %v732_v7 }
 0x2be   : > { %v417_v10 = vmul.f32 0.35355338, %v734_v8 }
 0x2bf   : > { %v481_v11 = vmul.f32 %v726_v53, %v480_v9 }
 0x2c0   : > { %v418_v12 = vmul.f32 %v722_v47, %v417_v10 }
 0x2c1   : > { %v482_v14 = vpack.c.bf16 %v481_v11, %v481_v11 }
 0x2c2   : > { %v419_v16 = vpack.c.bf16 %v418_v12, %v418_v12 }
 0x2c8   : > { %v421_v13 = vpop.permute.xlu0 %420 }
 0x2c9   : > { %v426_v15 = vsel %vm303_vm2, %v421_v13, 0 }
 0x2ca   : > { %435 = vmatpush.bf16.msrb.mxu1 %v426_v15 }
 0x2cb   : > { %646 = vmatmul.msk.bf16.vlgmr.msra.gmra.mxu2 %vm265_vm1, %v482_v14 }
 0x2cd   : > { %644 = vmatmul.msk.bf16.vlgmr.msrb.gmra.mxu1 %vm265_vm1, %v419_v16 }
 0x320   : > { %v316_v17 = vpop.f32.mrf.mxu2 }
 0x321   : > { %320 = vst.msk [vmem:[#allocation2] sm:$0xff] %vm265_vm1, %v316_v17 }
 0x328   : > { %v318_v18 = vpop.f32.mrf.mxu2 }
 0x33e   : > { %v374_v19 = vpop.f32.mrf.mxu2 }
 0x33f   : > { %379 = vrot.lane.b32.xlu1 %v374_v19, %s810_s11  ;;  %s562_s11 = sshll.u32 %s215_s10, 4  ;;  %s563_s11 = int_to_ptr.vmem [resolvable:$true] %s562_s11 }
 0x346   : > { %v376_v20 = vpop.f32.mrf.mxu2 }
 0x34a   : > { %v437_v21 = vpop.f32.mrf.mxu1 }
 0x34b   : > { %442 = vrot.lane.b32.xlu2 %v437_v21, %s811_s12  ;;  %s564_s12 = sshll.u32 %s560_s7, 4  ;;  %s565_s12 = int_to_ptr.hbm [resolvable:$true] %s564_s12 }
 0x34e   : > { %v500_v22 = vpop.f32.mrf.mxu2 }
 0x34f   : > { %505 = vrot.lane.b32.xlu1 %v500_v22, %s812_s13  ;;  %s749_s13 = sshra.s32 %s565_s12, 4  ;;  %s750_s13 = int_to_ptr.hbm [resolvable:$true] %s749_s13 }
 0x350   : > { %s751_s14 = scalar_lea.hbm %s750_s13, 8  ;;  %p756_p0 = scmp.lt.s32.totalorder %s750_s13, %s992_s5 }
 0x351   : > { %p752_p11 = scmp.ne.s32.totalorder %s750_s13, %s751_s14  ;;  %p757_p1 = scmp.lt.s32.totalorder %s755_s17, %s751_s14 }
 0x352   : > { %v439_v23 = vpop.f32.mrf.mxu1 }
 0x353   : > { %p753_p12 = pnand %p752_p11, %p881_p5  ;;  %p758_p2 = por %p757_p1, %p756_p0 }
 0x355   : > { %p754_p13 = pneg %p753_p12 }
 0x356   : > { %v502_v24 = vpop.f32.mrf.mxu2 }
 0x357   : > { %p759_p3 = pnand %p758_p2, %p754_p13 }
 0x3a5   : > { %v443_v28 = vpop.permute.xlu2 %442 }
 0x3b1   : > { %v380_v27 = vpop.permute.xlu1 %379 }
 0x3b2   : > { %383 = vst.msk [vmem:[#allocation2] sm:$0xff] %vm382_vm3, %v380_v27 }
 0x3b3   : > { %446 = vst.msk [vmem:[#allocation2] sm:$0xff] %vm445_vm4, %v443_v28 }
 0x3c1   : > { %v506_v29 = vpop.permute.xlu1 %505 }
 0x3c2   : > { %509 = vst.msk [vmem:[#allocation2] sm:$0xff] %vm508_vm5, %v506_v29 }
 0x3c9   : > { %v510_v30 = vld [vmem:[#allocation2] sm:$0xff] }
 0x3ca   : > { %v511_v31 = vpack.c.bf16 %v510_v30, %v510_v30 }
 0x3cc   : > { %655 = vmatmul.msk.bf16.vlgmr.msra.gmra.mxu0 %vm242_vm0, %v511_v31 }
 0x449   : > { %v544_v33 = vpop.f32.mrf.mxu0 }
 0x44a   : > { %v545_v34 = vadd.f32 %v718_v32, %v544_v33 }
 0x44c   : > { %548 = vst.msk [vmem:[%s215_s10] sm:$0xff] %vm242_vm0, %v545_v34 }
 0x44d   : > { %762 = shalt.err (!%p759_p3)
}
 0x44e   : > { %664 = dma.vmem_to_hbm [thread:$0]  (%p881_p5), %s563_s11, 128, %s565_s12, %s550_s22  }
 0x451   : > { %v546_v35 = vpop.f32.mrf.mxu0 }
 0x452 PF: > { %p670_p4 = scmp.ge.s32.totalorder %s797_s21, 2  ;;  %s576_s23 = sand.u32 1, %s785_s18  }
 0x453   : > { %s577_s30 = scalar_lea.sflag [#allocation4], %s576_s23 }
 0x454   : > { %p667_p7 = pnand %p670_p4, %p885_p6 }
 0x456   : > { %p668_p8 = pneg %p667_p7 }
 0x458   : > { %780 = dma.done.wait (%p668_p8), %s577_s30, 128  }
 0x459   : > { %782 = vsyncadd (%p668_p8), %s577_s30, 4294967168  ;;  %p15_p9 = scmp.ge.s32.totalorder %s868_s24, 4   ;;  %s995_s18 = smov %s789_s19 }
 0x45a   : > { %s996_s19 = smov %s793_s20  ;;  %s997_s20 = smov %s879_s27 }
 0x45b   : > { %s998_s21 = smov %s868_s24  ;;  %17 = sbr.rel (!%p15_p9) target bundleno = 3 (0x3), region = 75 }
 0x460   :  { %583 = vsyncpa [#allocation4], 1 }
 0x461   :  { %585 = vsyncpa [#allocation4 + $0x1], 1 }

</bundles_post_ra>
